<compile_context>
chip_gen: v5e
topology: v5e:2x2
jax: 0.10.0
libtpu: 0.0.40
codegen_flags: <defaults>
</compile_context>

<pallas_src>
import functools
import math

import jax
import jax.numpy as jnp
from jax import lax
from jax.experimental import pallas as pl
from jax.experimental.pallas import tpu as pltpu

VMEM_SPEC = pl.BlockSpec(memory_space=pltpu.MemorySpace.VMEM)
NEG_BIG = -1e30  # finite negative for the causal mask (avoids inf-inf -> NaN)


# ------------------------------ fused kernel -------------------------------

def _decoder_kernel(
    x_ref, enc_ref, pe_ref,
    wqkv_m_ref, bqkv_m_ref, wo_m_ref, bo_m_ref,
    wq_c_ref, bq_c_ref, wkv_c_ref, bkv_c_ref, wo_c_ref, bo_c_ref,
    n1a_ref, n1b_ref, n2a_ref, n2b_ref, n3a_ref, n3b_ref,
    w1_ref, b1_ref, w2_ref, b2_ref,
    o_ref,
    *, heads, n_blocks, eps,
):
    x = x_ref[...] + pe_ref[...]        # (S, D)  fused positional-encoding add
    enc = enc_ref[...]                  # (Se, D)
    S, D = x.shape
    d_k = D // heads
    scale = 1.0 / math.sqrt(d_k)

    # Causal bias built once for the whole fused forward.
    row = lax.broadcasted_iota(jnp.int32, (S, S), 0)
    col = lax.broadcasted_iota(jnp.int32, (S, S), 1)
    causal_bias = jnp.where(col > row, jnp.float32(NEG_BIG), jnp.float32(0.0))

    def softmax_rows(s):
        m = jnp.max(s, axis=-1, keepdims=True)
        e = jnp.exp(s - m)
        # divide -> EUP reciprocal (rides in the otherwise-idle EUP slot)
        return e * pl.reciprocal(jnp.sum(e, axis=-1, keepdims=True), approx=True)

    def mha(q_pack, kv_pack, wo, bo, bias):
        # q_pack: (Sq, D), kv_pack: (Skv, 2D) packed [K | V]; heads via static lane slices.
        parts = []
        for h in range(heads):
            lo, hi = h * d_k, (h + 1) * d_k
            qh = q_pack[:, lo:hi]                       # (Sq, d_k)
            kh = kv_pack[:, lo:hi]                      # (Skv, d_k)
            vh = kv_pack[:, D + lo:D + hi]              # (Skv, d_k)
            s = jnp.dot(qh, kh.T, preferred_element_type=jnp.float32) * scale
            if bias is not None:
                s = s + bias
            p = softmax_rows(s)                         # F.softmax(scores, dim=-1)
            parts.append(jnp.dot(p, vh, preferred_element_type=jnp.float32))
        concat = jnp.concatenate(parts, axis=-1)        # (Sq, D), matches torch concat order
        return jnp.dot(concat, wo, preferred_element_type=jnp.float32) + bo

    def add_norm(res, sub, a, b):
        # matches reference LayerNorm: unbiased std (n-1), eps added to std
        y = res + sub
        n = y.shape[-1]
        mean = jnp.mean(y, axis=-1, keepdims=True)
        d = y - mean
        var = jnp.sum(d * d, axis=-1, keepdims=True) * (1.0 / (n - 1))
        inv = pl.reciprocal(jnp.sqrt(var) + eps, approx=True)
        return a * (d * inv) + b

    # TODO(synk): dropout1/2/3 and attention-score dropout omitted (identity in eval mode).
    for blk in range(n_blocks):
        # --- masked self-attention (fused QKV projection) ---
        qkv = (jnp.dot(x, wqkv_m_ref[blk], preferred_element_type=jnp.float32)
               + bqkv_m_ref[blk])                              # (S, 3D)
        a1 = mha(qkv[:, :D], qkv[:, D:], wo_m_ref[blk], bo_m_ref[blk], causal_bias)
        x = add_norm(x, a1, n1a_ref[blk], n1b_ref[blk])

        # --- cross attention (fused K|V projection of encoder output) ---
        qc = (jnp.dot(x, wq_c_ref[blk], preferred_element_type=jnp.float32)
              + bq_c_ref[blk])                                 # (S, D)
        kvc = (jnp.dot(enc, wkv_c_ref[blk], preferred_element_type=jnp.float32)
               + bkv_c_ref[blk])                               # (Se, 2D)
        a2 = mha(qc, kvc, wo_c_ref[blk], bo_c_ref[blk], None)
        x = add_norm(x, a2, n2a_ref[blk], n2b_ref[blk])

        # --- position-wise FFN ---
        hdn = (jnp.dot(x, w1_ref[blk], preferred_element_type=jnp.float32)
               + b1_ref[blk])
        hdn = jnp.maximum(hdn, 0.0)                            # ReLU
        f = (jnp.dot(hdn, w2_ref[blk], preferred_element_type=jnp.float32)
             + b2_ref[blk])
        x = add_norm(x, f, n3a_ref[blk], n3b_ref[blk])

    # NOTE: reference Decoder.forward does not apply its final LayerNorm.
    o_ref[...] = x


# ------------------------------- glue (JAX) --------------------------------

def positional_encoding_table(pos, d_model):
    # pe[:, j] = sin(t / denom[j]) if j even else cos(t / denom[j])  (matches reference)
    t = pos.astype(jnp.float32)[:, None]                        # (S, 1)
    dims = jnp.arange(d_model, dtype=jnp.float32)
    denom = jnp.power(10000.0, 2.0 * dims / d_model)            # (D,)
    angle = t / denom[None, :]                                  # (S, D)
    even = (jnp.arange(d_model) % 2) == 0
    return jnp.where(even[None, :], jnp.sin(angle), jnp.cos(angle)).astype(jnp.float32)


def decoder_forward(params, x, enc_out, pos, heads):
    s, d_model = x.shape
    pe = positional_encoding_table(pos, d_model)
    n_blocks = params["wqkv_m"].shape[0]
    kern = functools.partial(_decoder_kernel, heads=heads, n_blocks=n_blocks, eps=1e-6)
    inputs = (
        x, enc_out, pe,
        params["wqkv_m"], params["bqkv_m"], params["wo_m"], params["bo_m"],
        params["wq_c"], params["bq_c"], params["wkv_c"], params["bkv_c"],
        params["wo_c"], params["bo_c"],
        params["n1a"], params["n1b"], params["n2a"], params["n2b"],
        params["n3a"], params["n3b"],
        params["w1"], params["b1"], params["w2"], params["b2"],
    )
    return pl.pallas_call(
        kern,
        out_shape=jax.ShapeDtypeStruct((s, d_model), jnp.float32),
        in_specs=[VMEM_SPEC] * len(inputs),
        out_specs=VMEM_SPEC,
    )(*inputs)


# --------------------------- parameter creation -----------------------------

def _init_linear(key, d_in, d_out):
    k1, k2 = jax.random.split(key)
    bound = 1.0 / math.sqrt(d_in)
    w = jax.random.uniform(k1, (d_in, d_out), jnp.float32, -bound, bound)  # stored as W^T
    b = jax.random.uniform(k2, (1, d_out), jnp.float32, -bound, bound)
    return w, b


def init_decoder(key, d_model, n_blocks, ff_hidden):
    per_block = []
    for k in jax.random.split(key, n_blocks):
        ks = jax.random.split(k, 10)
        wq_m, bq_m = _init_linear(ks[0], d_model, d_model)
        wk_m, bk_m = _init_linear(ks[1], d_model, d_model)
        wv_m, bv_m = _init_linear(ks[2], d_model, d_model)
        wo_m, bo_m = _init_linear(ks[3], d_model, d_model)
        wq_c, bq_c = _init_linear(ks[4], d_model, d_model)
        wk_c, bk_c = _init_linear(ks[5], d_model, d_model)
        wv_c, bv_c = _init_linear(ks[6], d_model, d_model)
        wo_c, bo_c = _init_linear(ks[7], d_model, d_model)
        w1, b1 = _init_linear(ks[8], d_model, ff_hidden)
        w2, b2 = _init_linear(ks[9], ff_hidden, d_model)
        per_block.append(dict(
            wqkv_m=jnp.concatenate([wq_m, wk_m, wv_m], axis=1),   # (D, 3D) fused QKV
            bqkv_m=jnp.concatenate([bq_m, bk_m, bv_m], axis=1),   # (1, 3D)
            wo_m=wo_m, bo_m=bo_m,
            wq_c=wq_c, bq_c=bq_c,
            wkv_c=jnp.concatenate([wk_c, wv_c], axis=1),          # (D, 2D) fused KV
            bkv_c=jnp.concatenate([bk_c, bv_c], axis=1),          # (1, 2D)
            wo_c=wo_c, bo_c=bo_c,
            n1a=jnp.ones((1, d_model), jnp.float32), n1b=jnp.zeros((1, d_model), jnp.float32),
            n2a=jnp.ones((1, d_model), jnp.float32), n2b=jnp.zeros((1, d_model), jnp.float32),
            n3a=jnp.ones((1, d_model), jnp.float32), n3b=jnp.zeros((1, d_model), jnp.float32),
            w1=w1, b1=b1, w2=w2, b2=b2,
        ))
    # Stack every parameter along a leading block axis so the whole decoder is ONE kernel.
    return {name: jnp.stack([blk[name] for blk in per_block], axis=0)
            for name in per_block[0]}


# ----------------------------------- main -----------------------------------

if __name__ == "__main__":
    d_model = 32
    heads = 4
    n_blocks = 2
    ff_hidden = 64
    seq = 8
    enc_seq = 8

    key = jax.random.PRNGKey(0)
    k_params, k_x, k_enc = jax.random.split(key, 3)

    params = init_decoder(k_params, d_model, n_blocks, ff_hidden)
    x = jax.random.normal(k_x, (seq, d_model), jnp.float32)
    enc_out = jax.random.normal(k_enc, (enc_seq, d_model), jnp.float32)
    pos = jnp.arange(seq, dtype=jnp.int32)

    fwd = jax.jit(functools.partial(decoder_forward, heads=heads))
    out = fwd(params, x, enc_out, pos)
    out = jax.block_until_ready(out)

    assert out.shape == (seq, d_model)
    assert bool(jnp.all(jnp.isfinite(out)))
    print("KERNEL_OK")
</pallas_src>

<mosaic_0001>
module attributes {stable_mosaic.version = 11 : i64} {
  func.func @_decoder_kernel(%arg0: memref<8x32xf32, #tpu.memory_space<vmem>>, %arg1: memref<8x32xf32, #tpu.memory_space<vmem>>, %arg2: memref<8x32xf32, #tpu.memory_space<vmem>>, %arg3: memref<2x32x96xf32, #tpu.memory_space<vmem>>, %arg4: memref<2x1x96xf32, #tpu.memory_space<vmem>>, %arg5: memref<2x32x32xf32, #tpu.memory_space<vmem>>, %arg6: memref<2x1x32xf32, #tpu.memory_space<vmem>>, %arg7: memref<2x32x32xf32, #tpu.memory_space<vmem>>, %arg8: memref<2x1x32xf32, #tpu.memory_space<vmem>>, %arg9: memref<2x32x64xf32, #tpu.memory_space<vmem>>, %arg10: memref<2x1x64xf32, #tpu.memory_space<vmem>>, %arg11: memref<2x32x32xf32, #tpu.memory_space<vmem>>, %arg12: memref<2x1x32xf32, #tpu.memory_space<vmem>>, %arg13: memref<2x1x32xf32, #tpu.memory_space<vmem>>, %arg14: memref<2x1x32xf32, #tpu.memory_space<vmem>>, %arg15: memref<2x1x32xf32, #tpu.memory_space<vmem>>, %arg16: memref<2x1x32xf32, #tpu.memory_space<vmem>>, %arg17: memref<2x1x32xf32, #tpu.memory_space<vmem>>, %arg18: memref<2x1x32xf32, #tpu.memory_space<vmem>>, %arg19: memref<2x32x64xf32, #tpu.memory_space<vmem>>, %arg20: memref<2x1x64xf32, #tpu.memory_space<vmem>>, %arg21: memref<2x64x32xf32, #tpu.memory_space<vmem>>, %arg22: memref<2x1x32xf32, #tpu.memory_space<vmem>>, %arg23: memref<8x32xf32, #tpu.memory_space<vmem>>) attributes {dimension_semantics = [], scalar_prefetch = 0 : i64, scratch_operands = 0 : i64, tpu.core_type = #tpu.core_type<tc>} {
    %c0 = arith.constant 0 : index
    %c0_0 = arith.constant 0 : index
    %0 = vector.load %arg0[%c0, %c0_0] : memref<8x32xf32, #tpu.memory_space<vmem>>, vector<8x32xf32>
    %c0_1 = arith.constant 0 : index
    %c0_2 = arith.constant 0 : index
    %1 = vector.load %arg2[%c0_1, %c0_2] : memref<8x32xf32, #tpu.memory_space<vmem>>, vector<8x32xf32>
    %2 = arith.addf %0, %1 : vector<8x32xf32>
    %c0_3 = arith.constant 0 : index
    %c0_4 = arith.constant 0 : index
    %3 = vector.load %arg1[%c0_3, %c0_4] : memref<8x32xf32, #tpu.memory_space<vmem>>, vector<8x32xf32>
    %4 = tpu.iota {dimensions = array<i32: 0>} : vector<8x8xi32>
    %5 = tpu.iota {dimensions = array<i32: 1>} : vector<8x8xi32>
    %6 = arith.cmpi sgt, %5, %4 : vector<8x8xi32>
    %cst = arith.constant -1.000000e+30 : f32
    %cst_5 = arith.constant 0.000000e+00 : f32
    %7 = vector.broadcast %cst : f32 to vector<8x8xf32>
    %8 = vector.broadcast %cst_5 : f32 to vector<8x8xf32>
    %9 = arith.select %6, %7, %8 : vector<8x8xi1>, vector<8x8xf32>
    %c0_6 = arith.constant 0 : index
    %c0_7 = arith.constant 0 : index
    %c0_8 = arith.constant 0 : index
    %10 = vector.load %arg3[%c0_6, %c0_7, %c0_8] : memref<2x32x96xf32, #tpu.memory_space<vmem>>, vector<1x32x96xf32>
    %11 = vector.shape_cast %10 : vector<1x32x96xf32> to vector<32x96xf32>
    %cst_9 = arith.constant dense<0.000000e+00> : vector<8x96xf32>
    %12 = tpu.matmul %2, %11, %cst_9 {dimension_numbers = #tpu.dot_dimension_numbers<[1], [0], [0], [1], [0, 0, 1, 1], [], []>} : vector<8x32xf32>, vector<32x96xf32>, vector<8x96xf32> -> vector<8x96xf32>
    %c0_10 = arith.constant 0 : index
    %c0_11 = arith.constant 0 : index
    %c0_12 = arith.constant 0 : index
    %13 = vector.load %arg4[%c0_10, %c0_11, %c0_12] : memref<2x1x96xf32, #tpu.memory_space<vmem>>, vector<1x1x96xf32>
    %14 = vector.shape_cast %13 : vector<1x1x96xf32> to vector<1x96xf32>
    %15 = vector.broadcast %14 : vector<1x96xf32> to vector<8x96xf32>
    %16 = arith.addf %12, %15 : vector<8x96xf32>
    %17 = vector.extract_strided_slice %16 {offsets = [0, 0], sizes = [8, 32], strides = [1, 1]} : vector<8x96xf32> to vector<8x32xf32>
    %18 = vector.extract_strided_slice %16 {offsets = [0, 32], sizes = [8, 64], strides = [1, 1]} : vector<8x96xf32> to vector<8x64xf32>
    %c0_13 = arith.constant 0 : index
    %c0_14 = arith.constant 0 : index
    %c0_15 = arith.constant 0 : index
    %19 = vector.load %arg5[%c0_13, %c0_14, %c0_15] : memref<2x32x32xf32, #tpu.memory_space<vmem>>, vector<1x32x32xf32>
    %20 = vector.shape_cast %19 : vector<1x32x32xf32> to vector<32x32xf32>
    %c0_16 = arith.constant 0 : index
    %c0_17 = arith.constant 0 : index
    %c0_18 = arith.constant 0 : index
    %21 = vector.load %arg6[%c0_16, %c0_17, %c0_18] : memref<2x1x32xf32, #tpu.memory_space<vmem>>, vector<1x1x32xf32>
    %22 = vector.shape_cast %21 : vector<1x1x32xf32> to vector<1x32xf32>
    %23 = vector.extract_strided_slice %17 {offsets = [0, 0], sizes = [8, 8], strides = [1, 1]} : vector<8x32xf32> to vector<8x8xf32>
    %24 = vector.extract_strided_slice %18 {offsets = [0, 0], sizes = [8, 8], strides = [1, 1]} : vector<8x64xf32> to vector<8x8xf32>
    %25 = vector.extract_strided_slice %18 {offsets = [0, 32], sizes = [8, 8], strides = [1, 1]} : vector<8x64xf32> to vector<8x8xf32>
    %26 = tpu.transpose %24, [1, 0] : vector<8x8xf32> -> vector<8x8xf32>
    %cst_19 = arith.constant dense<0.000000e+00> : vector<8x8xf32>
    %27 = tpu.matmul %23, %26, %cst_19 {dimension_numbers = #tpu.dot_dimension_numbers<[1], [0], [0], [1], [0, 0, 1, 1], [], []>} : vector<8x8xf32>, vector<8x8xf32>, vector<8x8xf32> -> vector<8x8xf32>
    %cst_20 = arith.constant 0.353553385 : f32
    %28 = vector.broadcast %cst_20 : f32 to vector<8x8xf32>
    %29 = arith.mulf %27, %28 : vector<8x8xf32>
    %30 = arith.addf %29, %9 : vector<8x8xf32>
    %cst_21 = arith.constant dense<0xFF800000> : vector<8xf32>
    %31 = vector.multi_reduction <maximumf>, %30, %cst_21 [1] : vector<8x8xf32> to vector<8xf32>
    %32 = vector.shape_cast %31 : vector<8xf32> to vector<8x1xf32>
    %33 = vector.broadcast %32 : vector<8x1xf32> to vector<8x8xf32>
    %34 = arith.subf %30, %33 : vector<8x8xf32>
    %35 = math.exp %34 : vector<8x8xf32>
    %cst_22 = arith.constant dense<0.000000e+00> : vector<8xf32>
    %36 = vector.multi_reduction <add>, %35, %cst_22 [1] : vector<8x8xf32> to vector<8xf32>
    %37 = vector.shape_cast %36 : vector<8xf32> to vector<8x1xf32>
    %38 = tpu.reciprocal %37 {approx = true} : vector<8x1xf32> -> vector<8x1xf32>
    %39 = vector.broadcast %38 : vector<8x1xf32> to vector<8x8xf32>
    %40 = arith.mulf %35, %39 : vector<8x8xf32>
    %cst_23 = arith.constant dense<0.000000e+00> : vector<8x8xf32>
    %41 = tpu.matmul %40, %25, %cst_23 {dimension_numbers = #tpu.dot_dimension_numbers<[1], [0], [0], [1], [0, 0, 1, 1], [], []>} : vector<8x8xf32>, vector<8x8xf32>, vector<8x8xf32> -> vector<8x8xf32>
    %42 = vector.extract_strided_slice %17 {offsets = [0, 8], sizes = [8, 8], strides = [1, 1]} : vector<8x32xf32> to vector<8x8xf32>
    %43 = vector.extract_strided_slice %18 {offsets = [0, 8], sizes = [8, 8], strides = [1, 1]} : vector<8x64xf32> to vector<8x8xf32>
    %44 = vector.extract_strided_slice %18 {offsets = [0, 40], sizes = [8, 8], strides = [1, 1]} : vector<8x64xf32> to vector<8x8xf32>
    %45 = tpu.transpose %43, [1, 0] : vector<8x8xf32> -> vector<8x8xf32>
    %cst_24 = arith.constant dense<0.000000e+00> : vector<8x8xf32>
    %46 = tpu.matmul %42, %45, %cst_24 {dimension_numbers = #tpu.dot_dimension_numbers<[1], [0], [0], [1], [0, 0, 1, 1], [], []>} : vector<8x8xf32>, vector<8x8xf32>, vector<8x8xf32> -> vector<8x8xf32>
    %cst_25 = arith.constant 0.353553385 : f32
    %47 = vector.broadcast %cst_25 : f32 to vector<8x8xf32>
    %48 = arith.mulf %46, %47 : vector<8x8xf32>
    %49 = arith.addf %48, %9 : vector<8x8xf32>
    %cst_26 = arith.constant dense<0xFF800000> : vector<8xf32>
    %50 = vector.multi_reduction <maximumf>, %49, %cst_26 [1] : vector<8x8xf32> to vector<8xf32>
    %51 = vector.shape_cast %50 : vector<8xf32> to vector<8x1xf32>
    %52 = vector.broadcast %51 : vector<8x1xf32> to vector<8x8xf32>
    %53 = arith.subf %49, %52 : vector<8x8xf32>
    %54 = math.exp %53 : vector<8x8xf32>
    %cst_27 = arith.constant dense<0.000000e+00> : vector<8xf32>
    %55 = vector.multi_reduction <add>, %54, %cst_27 [1] : vector<8x8xf32> to vector<8xf32>
    %56 = vector.shape_cast %55 : vector<8xf32> to vector<8x1xf32>
    %57 = tpu.reciprocal %56 {approx = true} : vector<8x1xf32> -> vector<8x1xf32>
    %58 = vector.broadcast %57 : vector<8x1xf32> to vector<8x8xf32>
    %59 = arith.mulf %54, %58 : vector<8x8xf32>
    %cst_28 = arith.constant dense<0.000000e+00> : vector<8x8xf32>
    %60 = tpu.matmul %59, %44, %cst_28 {dimension_numbers = #tpu.dot_dimension_numbers<[1], [0], [0], [1], [0, 0, 1, 1], [], []>} : vector<8x8xf32>, vector<8x8xf32>, vector<8x8xf32> -> vector<8x8xf32>
    %61 = vector.extract_strided_slice %17 {offsets = [0, 16], sizes = [8, 8], strides = [1, 1]} : vector<8x32xf32> to vector<8x8xf32>
    %62 = vector.extract_strided_slice %18 {offsets = [0, 16], sizes = [8, 8], strides = [1, 1]} : vector<8x64xf32> to vector<8x8xf32>
    %63 = vector.extract_strided_slice %18 {offsets = [0, 48], sizes = [8, 8], strides = [1, 1]} : vector<8x64xf32> to vector<8x8xf32>
    %64 = tpu.transpose %62, [1, 0] : vector<8x8xf32> -> vector<8x8xf32>
    %cst_29 = arith.constant dense<0.000000e+00> : vector<8x8xf32>
    %65 = tpu.matmul %61, %64, %cst_29 {dimension_numbers = #tpu.dot_dimension_numbers<[1], [0], [0], [1], [0, 0, 1, 1], [], []>} : vector<8x8xf32>, vector<8x8xf32>, vector<8x8xf32> -> vector<8x8xf32>
    %cst_30 = arith.constant 0.353553385 : f32
    %66 = vector.broadcast %cst_30 : f32 to vector<8x8xf32>
    %67 = arith.mulf %65, %66 : vector<8x8xf32>
    %68 = arith.addf %67, %9 : vector<8x8xf32>
    %cst_31 = arith.constant dense<0xFF800000> : vector<8xf32>
    %69 = vector.multi_reduction <maximumf>, %68, %cst_31 [1] : vector<8x8xf32> to vector<8xf32>
    %70 = vector.shape_cast %69 : vector<8xf32> to vector<8x1xf32>
    %71 = vector.broadcast %70 : vector<8x1xf32> to vector<8x8xf32>
    %72 = arith.subf %68, %71 : vector<8x8xf32>
    %73 = math.exp %72 : vector<8x8xf32>
    %cst_32 = arith.constant dense<0.000000e+00> : vector<8xf32>
    %74 = vector.multi_reduction <add>, %73, %cst_32 [1] : vector<8x8xf32> to vector<8xf32>
    %75 = vector.shape_cast %74 : vector<8xf32> to vector<8x1xf32>
    %76 = tpu.reciprocal %75 {approx = true} : vector<8x1xf32> -> vector<8x1xf32>
    %77 = vector.broadcast %76 : vector<8x1xf32> to vector<8x8xf32>
    %78 = arith.mulf %73, %77 : vector<8x8xf32>
    %cst_33 = arith.constant dense<0.000000e+00> : vector<8x8xf32>
    %79 = tpu.matmul %78, %63, %cst_33 {dimension_numbers = #tpu.dot_dimension_numbers<[1], [0], [0], [1], [0, 0, 1, 1], [], []>} : vector<8x8xf32>, vector<8x8xf32>, vector<8x8xf32> -> vector<8x8xf32>
    %80 = vector.extract_strided_slice %17 {offsets = [0, 24], sizes = [8, 8], strides = [1, 1]} : vector<8x32xf32> to vector<8x8xf32>
    %81 = vector.extract_strided_slice %18 {offsets = [0, 24], sizes = [8, 8], strides = [1, 1]} : vector<8x64xf32> to vector<8x8xf32>
    %82 = vector.extract_strided_slice %18 {offsets = [0, 56], sizes = [8, 8], strides = [1, 1]} : vector<8x64xf32> to vector<8x8xf32>
    %83 = tpu.transpose %81, [1, 0] : vector<8x8xf32> -> vector<8x8xf32>
    %cst_34 = arith.constant dense<0.000000e+00> : vector<8x8xf32>
    %84 = tpu.matmul %80, %83, %cst_34 {dimension_numbers = #tpu.dot_dimension_numbers<[1], [0], [0], [1], [0, 0, 1, 1], [], []>} : vector<8x8xf32>, vector<8x8xf32>, vector<8x8xf32> -> vector<8x8xf32>
    %cst_35 = arith.constant 0.353553385 : f32
    %85 = vector.broadcast %cst_35 : f32 to vector<8x8xf32>
    %86 = arith.mulf %84, %85 : vector<8x8xf32>
    %87 = arith.addf %86, %9 : vector<8x8xf32>
    %cst_36 = arith.constant dense<0xFF800000> : vector<8xf32>
    %88 = vector.multi_reduction <maximumf>, %87, %cst_36 [1] : vector<8x8xf32> to vector<8xf32>
    %89 = vector.shape_cast %88 : vector<8xf32> to vector<8x1xf32>
    %90 = vector.broadcast %89 : vector<8x1xf32> to vector<8x8xf32>
    %91 = arith.subf %87, %90 : vector<8x8xf32>
    %92 = math.exp %91 : vector<8x8xf32>
    %cst_37 = arith.constant dense<0.000000e+00> : vector<8xf32>
    %93 = vector.multi_reduction <add>, %92, %cst_37 [1] : vector<8x8xf32> to vector<8xf32>
    %94 = vector.shape_cast %93 : vector<8xf32> to vector<8x1xf32>
    %95 = tpu.reciprocal %94 {approx = true} : vector<8x1xf32> -> vector<8x1xf32>
    %96 = vector.broadcast %95 : vector<8x1xf32> to vector<8x8xf32>
    %97 = arith.mulf %92, %96 : vector<8x8xf32>
    %cst_38 = arith.constant dense<0.000000e+00> : vector<8x8xf32>
    %98 = tpu.matmul %97, %82, %cst_38 {dimension_numbers = #tpu.dot_dimension_numbers<[1], [0], [0], [1], [0, 0, 1, 1], [], []>} : vector<8x8xf32>, vector<8x8xf32>, vector<8x8xf32> -> vector<8x8xf32>
    %99 = tpu.concatenate %41, %60, %79, %98 in 1 : vector<8x8xf32>, vector<8x8xf32>, vector<8x8xf32>, vector<8x8xf32> -> vector<8x32xf32>
    %cst_39 = arith.constant dense<0.000000e+00> : vector<8x32xf32>
    %100 = tpu.matmul %99, %20, %cst_39 {dimension_numbers = #tpu.dot_dimension_numbers<[1], [0], [0], [1], [0, 0, 1, 1], [], []>} : vector<8x32xf32>, vector<32x32xf32>, vector<8x32xf32> -> vector<8x32xf32>
    %101 = vector.broadcast %22 : vector<1x32xf32> to vector<8x32xf32>
    %102 = arith.addf %100, %101 : vector<8x32xf32>
    %c0_40 = arith.constant 0 : index
    %c0_41 = arith.constant 0 : index
    %c0_42 = arith.constant 0 : index
    %103 = vector.load %arg13[%c0_40, %c0_41, %c0_42] : memref<2x1x32xf32, #tpu.memory_space<vmem>>, vector<1x1x32xf32>
    %104 = vector.shape_cast %103 : vector<1x1x32xf32> to vector<1x32xf32>
    %c0_43 = arith.constant 0 : index
    %c0_44 = arith.constant 0 : index
    %c0_45 = arith.constant 0 : index
    %105 = vector.load %arg14[%c0_43, %c0_44, %c0_45] : memref<2x1x32xf32, #tpu.memory_space<vmem>>, vector<1x1x32xf32>
    %106 = vector.shape_cast %105 : vector<1x1x32xf32> to vector<1x32xf32>
    %107 = arith.addf %2, %102 : vector<8x32xf32>
    %cst_46 = arith.constant dense<0.000000e+00> : vector<8xf32>
    %108 = vector.multi_reduction <add>, %107, %cst_46 [1] : vector<8x32xf32> to vector<8xf32>
    %109 = vector.shape_cast %108 : vector<8xf32> to vector<8x1xf32>
    %cst_47 = arith.constant 3.200000e+01 : f32
    %110 = vector.broadcast %cst_47 : f32 to vector<8x1xf32>
    %111 = arith.divf %109, %110 : vector<8x1xf32>
    %112 = vector.broadcast %111 : vector<8x1xf32> to vector<8x32xf32>
    %113 = arith.subf %107, %112 : vector<8x32xf32>
    %114 = arith.mulf %113, %113 : vector<8x32xf32>
    %cst_48 = arith.constant dense<0.000000e+00> : vector<8xf32>
    %115 = vector.multi_reduction <add>, %114, %cst_48 [1] : vector<8x32xf32> to vector<8xf32>
    %116 = vector.shape_cast %115 : vector<8xf32> to vector<8x1xf32>
    %cst_49 = arith.constant 0.0322580636 : f32
    %117 = vector.broadcast %cst_49 : f32 to vector<8x1xf32>
    %118 = arith.mulf %116, %117 : vector<8x1xf32>
    %119 = math.sqrt %118 : vector<8x1xf32>
    %cst_50 = arith.constant 9.99999997E-7 : f32
    %120 = vector.broadcast %cst_50 : f32 to vector<8x1xf32>
    %121 = arith.addf %119, %120 : vector<8x1xf32>
    %122 = tpu.reciprocal %121 {approx = true} : vector<8x1xf32> -> vector<8x1xf32>
    %123 = vector.broadcast %122 : vector<8x1xf32> to vector<8x32xf32>
    %124 = arith.mulf %113, %123 : vector<8x32xf32>
    %125 = vector.broadcast %104 : vector<1x32xf32> to vector<8x32xf32>
    %126 = arith.mulf %125, %124 : vector<8x32xf32>
    %127 = vector.broadcast %106 : vector<1x32xf32> to vector<8x32xf32>
    %128 = arith.addf %126, %127 : vector<8x32xf32>
    %c0_51 = arith.constant 0 : index
    %c0_52 = arith.constant 0 : index
    %c0_53 = arith.constant 0 : index
    %129 = vector.load %arg7[%c0_51, %c0_52, %c0_53] : memref<2x32x32xf32, #tpu.memory_space<vmem>>, vector<1x32x32xf32>
    %130 = vector.shape_cast %129 : vector<1x32x32xf32> to vector<32x32xf32>
    %cst_54 = arith.constant dense<0.000000e+00> : vector<8x32xf32>
    %131 = tpu.matmul %128, %130, %cst_54 {dimension_numbers = #tpu.dot_dimension_numbers<[1], [0], [0], [1], [0, 0, 1, 1], [], []>} : vector<8x32xf32>, vector<32x32xf32>, vector<8x32xf32> -> vector<8x32xf32>
    %c0_55 = arith.constant 0 : index
    %c0_56 = arith.constant 0 : index
    %c0_57 = arith.constant 0 : index
    %132 = vector.load %arg8[%c0_55, %c0_56, %c0_57] : memref<2x1x32xf32, #tpu.memory_space<vmem>>, vector<1x1x32xf32>
    %133 = vector.shape_cast %132 : vector<1x1x32xf32> to vector<1x32xf32>
    %134 = vector.broadcast %133 : vector<1x32xf32> to vector<8x32xf32>
    %135 = arith.addf %131, %134 : vector<8x32xf32>
    %c0_58 = arith.constant 0 : index
    %c0_59 = arith.constant 0 : index
    %c0_60 = arith.constant 0 : index
    %136 = vector.load %arg9[%c0_58, %c0_59, %c0_60] : memref<2x32x64xf32, #tpu.memory_space<vmem>>, vector<1x32x64xf32>
    %137 = vector.shape_cast %136 : vector<1x32x64xf32> to vector<32x64xf32>
    %cst_61 = arith.constant dense<0.000000e+00> : vector<8x64xf32>
    %138 = tpu.matmul %3, %137, %cst_61 {dimension_numbers = #tpu.dot_dimension_numbers<[1], [0], [0], [1], [0, 0, 1, 1], [], []>} : vector<8x32xf32>, vector<32x64xf32>, vector<8x64xf32> -> vector<8x64xf32>
    %c0_62 = arith.constant 0 : index
    %c0_63 = arith.constant 0 : index
    %c0_64 = arith.constant 0 : index
    %139 = vector.load %arg10[%c0_62, %c0_63, %c0_64] : memref<2x1x64xf32, #tpu.memory_space<vmem>>, vector<1x1x64xf32>
    %140 = vector.shape_cast %139 : vector<1x1x64xf32> to vector<1x64xf32>
    %141 = vector.broadcast %140 : vector<1x64xf32> to vector<8x64xf32>
    %142 = arith.addf %138, %141 : vector<8x64xf32>
    %c0_65 = arith.constant 0 : index
    %c0_66 = arith.constant 0 : index
    %c0_67 = arith.constant 0 : index
    %143 = vector.load %arg11[%c0_65, %c0_66, %c0_67] : memref<2x32x32xf32, #tpu.memory_space<vmem>>, vector<1x32x32xf32>
    %144 = vector.shape_cast %143 : vector<1x32x32xf32> to vector<32x32xf32>
    %c0_68 = arith.constant 0 : index
    %c0_69 = arith.constant 0 : index
    %c0_70 = arith.constant 0 : index
    %145 = vector.load %arg12[%c0_68, %c0_69, %c0_70] : memref<2x1x32xf32, #tpu.memory_space<vmem>>, vector<1x1x32xf32>
    %146 = vector.shape_cast %145 : vector<1x1x32xf32> to vector<1x32xf32>
    %147 = vector.extract_strided_slice %135 {offsets = [0, 0], sizes = [8, 8], strides = [1, 1]} : vector<8x32xf32> to vector<8x8xf32>
    %148 = vector.extract_strided_slice %142 {offsets = [0, 0], sizes = [8, 8], strides = [1, 1]} : vector<8x64xf32> to vector<8x8xf32>
    %149 = vector.extract_strided_slice %142 {offsets = [0, 32], sizes = [8, 8], strides = [1, 1]} : vector<8x64xf32> to vector<8x8xf32>
    %150 = tpu.transpose %148, [1, 0] : vector<8x8xf32> -> vector<8x8xf32>
    %cst_71 = arith.constant dense<0.000000e+00> : vector<8x8xf32>
    %151 = tpu.matmul %147, %150, %cst_71 {dimension_numbers = #tpu.dot_dimension_numbers<[1], [0], [0], [1], [0, 0, 1, 1], [], []>} : vector<8x8xf32>, vector<8x8xf32>, vector<8x8xf32> -> vector<8x8xf32>
    %cst_72 = arith.constant 0.353553385 : f32
    %152 = vector.broadcast %cst_72 : f32 to vector<8x8xf32>
    %153 = arith.mulf %151, %152 : vector<8x8xf32>
    %cst_73 = arith.constant dense<0xFF800000> : vector<8xf32>
    %154 = vector.multi_reduction <maximumf>, %153, %cst_73 [1] : vector<8x8xf32> to vector<8xf32>
    %155 = vector.shape_cast %154 : vector<8xf32> to vector<8x1xf32>
    %156 = vector.broadcast %155 : vector<8x1xf32> to vector<8x8xf32>
    %157 = arith.subf %153, %156 : vector<8x8xf32>
    %158 = math.exp %157 : vector<8x8xf32>
    %cst_74 = arith.constant dense<0.000000e+00> : vector<8xf32>
    %159 = vector.multi_reduction <add>, %158, %cst_74 [1] : vector<8x8xf32> to vector<8xf32>
    %160 = vector.shape_cast %159 : vector<8xf32> to vector<8x1xf32>
    %161 = tpu.reciprocal %160 {approx = true} : vector<8x1xf32> -> vector<8x1xf32>
    %162 = vector.broadcast %161 : vector<8x1xf32> to vector<8x8xf32>
    %163 = arith.mulf %158, %162 : vector<8x8xf32>
    %cst_75 = arith.constant dense<0.000000e+00> : vector<8x8xf32>
    %164 = tpu.matmul %163, %149, %cst_75 {dimension_numbers = #tpu.dot_dimension_numbers<[1], [0], [0], [1], [0, 0, 1, 1], [], []>} : vector<8x8xf32>, vector<8x8xf32>, vector<8x8xf32> -> vector<8x8xf32>
    %165 = vector.extract_strided_slice %135 {offsets = [0, 8], sizes = [8, 8], strides = [1, 1]} : vector<8x32xf32> to vector<8x8xf32>
    %166 = vector.extract_strided_slice %142 {offsets = [0, 8], sizes = [8, 8], strides = [1, 1]} : vector<8x64xf32> to vector<8x8xf32>
    %167 = vector.extract_strided_slice %142 {offsets = [0, 40], sizes = [8, 8], strides = [1, 1]} : vector<8x64xf32> to vector<8x8xf32>
    %168 = tpu.transpose %166, [1, 0] : vector<8x8xf32> -> vector<8x8xf32>
    %cst_76 = arith.constant dense<0.000000e+00> : vector<8x8xf32>
    %169 = tpu.matmul %165, %168, %cst_76 {dimension_numbers = #tpu.dot_dimension_numbers<[1], [0], [0], [1], [0, 0, 1, 1], [], []>} : vector<8x8xf32>, vector<8x8xf32>, vector<8x8xf32> -> vector<8x8xf32>
    %cst_77 = arith.constant 0.353553385 : f32
    %170 = vector.broadcast %cst_77 : f32 to vector<8x8xf32>
    %171 = arith.mulf %169, %170 : vector<8x8xf32>
    %cst_78 = arith.constant dense<0xFF800000> : vector<8xf32>
    %172 = vector.multi_reduction <maximumf>, %171, %cst_78 [1] : vector<8x8xf32> to vector<8xf32>
    %173 = vector.shape_cast %172 : vector<8xf32> to vector<8x1xf32>
    %174 = vector.broadcast %173 : vector<8x1xf32> to vector<8x8xf32>
    %175 = arith.subf %171, %174 : vector<8x8xf32>
    %176 = math.exp %175 : vector<8x8xf32>
    %cst_79 = arith.constant dense<0.000000e+00> : vector<8xf32>
    %177 = vector.multi_reduction <add>, %176, %cst_79 [1] : vector<8x8xf32> to vector<8xf32>
    %178 = vector.shape_cast %177 : vector<8xf32> to vector<8x1xf32>
    %179 = tpu.reciprocal %178 {approx = true} : vector<8x1xf32> -> vector<8x1xf32>
    %180 = vector.broadcast %179 : vector<8x1xf32> to vector<8x8xf32>
    %181 = arith.mulf %176, %180 : vector<8x8xf32>
    %cst_80 = arith.constant dense<0.000000e+00> : vector<8x8xf32>
    %182 = tpu.matmul %181, %167, %cst_80 {dimension_numbers = #tpu.dot_dimension_numbers<[1], [0], [0], [1], [0, 0, 1, 1], [], []>} : vector<8x8xf32>, vector<8x8xf32>, vector<8x8xf32> -> vector<8x8xf32>
    %183 = vector.extract_strided_slice %135 {offsets = [0, 16], sizes = [8, 8], strides = [1, 1]} : vector<8x32xf32> to vector<8x8xf32>
    %184 = vector.extract_strided_slice %142 {offsets = [0, 16], sizes = [8, 8], strides = [1, 1]} : vector<8x64xf32> to vector<8x8xf32>
    %185 = vector.extract_strided_slice %142 {offsets = [0, 48], sizes = [8, 8], strides = [1, 1]} : vector<8x64xf32> to vector<8x8xf32>
    %186 = tpu.transpose %184, [1, 0] : vector<8x8xf32> -> vector<8x8xf32>
    %cst_81 = arith.constant dense<0.000000e+00> : vector<8x8xf32>
    %187 = tpu.matmul %183, %186, %cst_81 {dimension_numbers = #tpu.dot_dimension_numbers<[1], [0], [0], [1], [0, 0, 1, 1], [], []>} : vector<8x8xf32>, vector<8x8xf32>, vector<8x8xf32> -> vector<8x8xf32>
    %cst_82 = arith.constant 0.353553385 : f32
    %188 = vector.broadcast %cst_82 : f32 to vector<8x8xf32>
    %189 = arith.mulf %187, %188 : vector<8x8xf32>
    %cst_83 = arith.constant dense<0xFF800000> : vector<8xf32>
    %190 = vector.multi_reduction <maximumf>, %189, %cst_83 [1] : vector<8x8xf32> to vector<8xf32>
    %191 = vector.shape_cast %190 : vector<8xf32> to vector<8x1xf32>
    %192 = vector.broadcast %191 : vector<8x1xf32> to vector<8x8xf32>
    %193 = arith.subf %189, %192 : vector<8x8xf32>
    %194 = math.exp %193 : vector<8x8xf32>
    %cst_84 = arith.constant dense<0.000000e+00> : vector<8xf32>
    %195 = vector.multi_reduction <add>, %194, %cst_84 [1] : vector<8x8xf32> to vector<8xf32>
    %196 = vector.shape_cast %195 : vector<8xf32> to vector<8x1xf32>
    %197 = tpu.reciprocal %196 {approx = true} : vector<8x1xf32> -> vector<8x1xf32>
    %198 = vector.broadcast %197 : vector<8x1xf32> to vector<8x8xf32>
    %199 = arith.mulf %194, %198 : vector<8x8xf32>
    %cst_85 = arith.constant dense<0.000000e+00> : vector<8x8xf32>
    %200 = tpu.matmul %199, %185, %cst_85 {dimension_numbers = #tpu.dot_dimension_numbers<[1], [0], [0], [1], [0, 0, 1, 1], [], []>} : vector<8x8xf32>, vector<8x8xf32>, vector<8x8xf32> -> vector<8x8xf32>
    %201 = vector.extract_strided_slice %135 {offsets = [0, 24], sizes = [8, 8], strides = [1, 1]} : vector<8x32xf32> to vector<8x8xf32>
    %202 = vector.extract_strided_slice %142 {offsets = [0, 24], sizes = [8, 8], strides = [1, 1]} : vector<8x64xf32> to vector<8x8xf32>
    %203 = vector.extract_strided_slice %142 {offsets = [0, 56], sizes = [8, 8], strides = [1, 1]} : vector<8x64xf32> to vector<8x8xf32>
    %204 = tpu.transpose %202, [1, 0] : vector<8x8xf32> -> vector<8x8xf32>
    %cst_86 = arith.constant dense<0.000000e+00> : vector<8x8xf32>
    %205 = tpu.matmul %201, %204, %cst_86 {dimension_numbers = #tpu.dot_dimension_numbers<[1], [0], [0], [1], [0, 0, 1, 1], [], []>} : vector<8x8xf32>, vector<8x8xf32>, vector<8x8xf32> -> vector<8x8xf32>
    %cst_87 = arith.constant 0.353553385 : f32
    %206 = vector.broadcast %cst_87 : f32 to vector<8x8xf32>
    %207 = arith.mulf %205, %206 : vector<8x8xf32>
    %cst_88 = arith.constant dense<0xFF800000> : vector<8xf32>
    %208 = vector.multi_reduction <maximumf>, %207, %cst_88 [1] : vector<8x8xf32> to vector<8xf32>
    %209 = vector.shape_cast %208 : vector<8xf32> to vector<8x1xf32>
    %210 = vector.broadcast %209 : vector<8x1xf32> to vector<8x8xf32>
    %211 = arith.subf %207, %210 : vector<8x8xf32>
    %212 = math.exp %211 : vector<8x8xf32>
    %cst_89 = arith.constant dense<0.000000e+00> : vector<8xf32>
    %213 = vector.multi_reduction <add>, %212, %cst_89 [1] : vector<8x8xf32> to vector<8xf32>
    %214 = vector.shape_cast %213 : vector<8xf32> to vector<8x1xf32>
    %215 = tpu.reciprocal %214 {approx = true} : vector<8x1xf32> -> vector<8x1xf32>
    %216 = vector.broadcast %215 : vector<8x1xf32> to vector<8x8xf32>
    %217 = arith.mulf %212, %216 : vector<8x8xf32>
    %cst_90 = arith.constant dense<0.000000e+00> : vector<8x8xf32>
    %218 = tpu.matmul %217, %203, %cst_90 {dimension_numbers = #tpu.dot_dimension_numbers<[1], [0], [0], [1], [0, 0, 1, 1], [], []>} : vector<8x8xf32>, vector<8x8xf32>, vector<8x8xf32> -> vector<8x8xf32>
    %219 = tpu.concatenate %164, %182, %200, %218 in 1 : vector<8x8xf32>, vector<8x8xf32>, vector<8x8xf32>, vector<8x8xf32> -> vector<8x32xf32>
    %cst_91 = arith.constant dense<0.000000e+00> : vector<8x32xf32>
    %220 = tpu.matmul %219, %144, %cst_91 {dimension_numbers = #tpu.dot_dimension_numbers<[1], [0], [0], [1], [0, 0, 1, 1], [], []>} : vector<8x32xf32>, vector<32x32xf32>, vector<8x32xf32> -> vector<8x32xf32>
    %221 = vector.broadcast %146 : vector<1x32xf32> to vector<8x32xf32>
    %222 = arith.addf %220, %221 : vector<8x32xf32>
    %c0_92 = arith.constant 0 : index
    %c0_93 = arith.constant 0 : index
    %c0_94 = arith.constant 0 : index
    %223 = vector.load %arg15[%c0_92, %c0_93, %c0_94] : memref<2x1x32xf32, #tpu.memory_space<vmem>>, vector<1x1x32xf32>
    %224 = vector.shape_cast %223 : vector<1x1x32xf32> to vector<1x32xf32>
    %c0_95 = arith.constant 0 : index
    %c0_96 = arith.constant 0 : index
    %c0_97 = arith.constant 0 : index
    %225 = vector.load %arg16[%c0_95, %c0_96, %c0_97] : memref<2x1x32xf32, #tpu.memory_space<vmem>>, vector<1x1x32xf32>
    %226 = vector.shape_cast %225 : vector<1x1x32xf32> to vector<1x32xf32>
    %227 = arith.addf %128, %222 : vector<8x32xf32>
    %cst_98 = arith.constant dense<0.000000e+00> : vector<8xf32>
    %228 = vector.multi_reduction <add>, %227, %cst_98 [1] : vector<8x32xf32> to vector<8xf32>
    %229 = vector.shape_cast %228 : vector<8xf32> to vector<8x1xf32>
    %cst_99 = arith.constant 3.200000e+01 : f32
    %230 = vector.broadcast %cst_99 : f32 to vector<8x1xf32>
    %231 = arith.divf %229, %230 : vector<8x1xf32>
    %232 = vector.broadcast %231 : vector<8x1xf32> to vector<8x32xf32>
    %233 = arith.subf %227, %232 : vector<8x32xf32>
    %234 = arith.mulf %233, %233 : vector<8x32xf32>
    %cst_100 = arith.constant dense<0.000000e+00> : vector<8xf32>
    %235 = vector.multi_reduction <add>, %234, %cst_100 [1] : vector<8x32xf32> to vector<8xf32>
    %236 = vector.shape_cast %235 : vector<8xf32> to vector<8x1xf32>
    %cst_101 = arith.constant 0.0322580636 : f32
    %237 = vector.broadcast %cst_101 : f32 to vector<8x1xf32>
    %238 = arith.mulf %236, %237 : vector<8x1xf32>
    %239 = math.sqrt %238 : vector<8x1xf32>
    %cst_102 = arith.constant 9.99999997E-7 : f32
    %240 = vector.broadcast %cst_102 : f32 to vector<8x1xf32>
    %241 = arith.addf %239, %240 : vector<8x1xf32>
    %242 = tpu.reciprocal %241 {approx = true} : vector<8x1xf32> -> vector<8x1xf32>
    %243 = vector.broadcast %242 : vector<8x1xf32> to vector<8x32xf32>
    %244 = arith.mulf %233, %243 : vector<8x32xf32>
    %245 = vector.broadcast %224 : vector<1x32xf32> to vector<8x32xf32>
    %246 = arith.mulf %245, %244 : vector<8x32xf32>
    %247 = vector.broadcast %226 : vector<1x32xf32> to vector<8x32xf32>
    %248 = arith.addf %246, %247 : vector<8x32xf32>
    %c0_103 = arith.constant 0 : index
    %c0_104 = arith.constant 0 : index
    %c0_105 = arith.constant 0 : index
    %249 = vector.load %arg19[%c0_103, %c0_104, %c0_105] : memref<2x32x64xf32, #tpu.memory_space<vmem>>, vector<1x32x64xf32>
    %250 = vector.shape_cast %249 : vector<1x32x64xf32> to vector<32x64xf32>
    %cst_106 = arith.constant dense<0.000000e+00> : vector<8x64xf32>
    %251 = tpu.matmul %248, %250, %cst_106 {dimension_numbers = #tpu.dot_dimension_numbers<[1], [0], [0], [1], [0, 0, 1, 1], [], []>} : vector<8x32xf32>, vector<32x64xf32>, vector<8x64xf32> -> vector<8x64xf32>
    %c0_107 = arith.constant 0 : index
    %c0_108 = arith.constant 0 : index
    %c0_109 = arith.constant 0 : index
    %252 = vector.load %arg20[%c0_107, %c0_108, %c0_109] : memref<2x1x64xf32, #tpu.memory_space<vmem>>, vector<1x1x64xf32>
    %253 = vector.shape_cast %252 : vector<1x1x64xf32> to vector<1x64xf32>
    %254 = vector.broadcast %253 : vector<1x64xf32> to vector<8x64xf32>
    %255 = arith.addf %251, %254 : vector<8x64xf32>
    %cst_110 = arith.constant 0.000000e+00 : f32
    %256 = vector.broadcast %cst_110 : f32 to vector<8x64xf32>
    %257 = arith.maximumf %255, %256 : vector<8x64xf32>
    %c0_111 = arith.constant 0 : index
    %c0_112 = arith.constant 0 : index
    %c0_113 = arith.constant 0 : index
    %258 = vector.load %arg21[%c0_111, %c0_112, %c0_113] : memref<2x64x32xf32, #tpu.memory_space<vmem>>, vector<1x64x32xf32>
    %259 = vector.shape_cast %258 : vector<1x64x32xf32> to vector<64x32xf32>
    %cst_114 = arith.constant dense<0.000000e+00> : vector<8x32xf32>
    %260 = tpu.matmul %257, %259, %cst_114 {dimension_numbers = #tpu.dot_dimension_numbers<[1], [0], [0], [1], [0, 0, 1, 1], [], []>} : vector<8x64xf32>, vector<64x32xf32>, vector<8x32xf32> -> vector<8x32xf32>
    %c0_115 = arith.constant 0 : index
    %c0_116 = arith.constant 0 : index
    %c0_117 = arith.constant 0 : index
    %261 = vector.load %arg22[%c0_115, %c0_116, %c0_117] : memref<2x1x32xf32, #tpu.memory_space<vmem>>, vector<1x1x32xf32>
    %262 = vector.shape_cast %261 : vector<1x1x32xf32> to vector<1x32xf32>
    %263 = vector.broadcast %262 : vector<1x32xf32> to vector<8x32xf32>
    %264 = arith.addf %260, %263 : vector<8x32xf32>
    %c0_118 = arith.constant 0 : index
    %c0_119 = arith.constant 0 : index
    %c0_120 = arith.constant 0 : index
    %265 = vector.load %arg17[%c0_118, %c0_119, %c0_120] : memref<2x1x32xf32, #tpu.memory_space<vmem>>, vector<1x1x32xf32>
    %266 = vector.shape_cast %265 : vector<1x1x32xf32> to vector<1x32xf32>
    %c0_121 = arith.constant 0 : index
    %c0_122 = arith.constant 0 : index
    %c0_123 = arith.constant 0 : index
    %267 = vector.load %arg18[%c0_121, %c0_122, %c0_123] : memref<2x1x32xf32, #tpu.memory_space<vmem>>, vector<1x1x32xf32>
    %268 = vector.shape_cast %267 : vector<1x1x32xf32> to vector<1x32xf32>
    %269 = arith.addf %248, %264 : vector<8x32xf32>
    %cst_124 = arith.constant dense<0.000000e+00> : vector<8xf32>
    %270 = vector.multi_reduction <add>, %269, %cst_124 [1] : vector<8x32xf32> to vector<8xf32>
    %271 = vector.shape_cast %270 : vector<8xf32> to vector<8x1xf32>
    %cst_125 = arith.constant 3.200000e+01 : f32
    %272 = vector.broadcast %cst_125 : f32 to vector<8x1xf32>
    %273 = arith.divf %271, %272 : vector<8x1xf32>
    %274 = vector.broadcast %273 : vector<8x1xf32> to vector<8x32xf32>
    %275 = arith.subf %269, %274 : vector<8x32xf32>
    %276 = arith.mulf %275, %275 : vector<8x32xf32>
    %cst_126 = arith.constant dense<0.000000e+00> : vector<8xf32>
    %277 = vector.multi_reduction <add>, %276, %cst_126 [1] : vector<8x32xf32> to vector<8xf32>
    %278 = vector.shape_cast %277 : vector<8xf32> to vector<8x1xf32>
    %cst_127 = arith.constant 0.0322580636 : f32
    %279 = vector.broadcast %cst_127 : f32 to vector<8x1xf32>
    %280 = arith.mulf %278, %279 : vector<8x1xf32>
    %281 = math.sqrt %280 : vector<8x1xf32>
    %cst_128 = arith.constant 9.99999997E-7 : f32
    %282 = vector.broadcast %cst_128 : f32 to vector<8x1xf32>
    %283 = arith.addf %281, %282 : vector<8x1xf32>
    %284 = tpu.reciprocal %283 {approx = true} : vector<8x1xf32> -> vector<8x1xf32>
    %285 = vector.broadcast %284 : vector<8x1xf32> to vector<8x32xf32>
    %286 = arith.mulf %275, %285 : vector<8x32xf32>
    %287 = vector.broadcast %266 : vector<1x32xf32> to vector<8x32xf32>
    %288 = arith.mulf %287, %286 : vector<8x32xf32>
    %289 = vector.broadcast %268 : vector<1x32xf32> to vector<8x32xf32>
    %290 = arith.addf %288, %289 : vector<8x32xf32>
    %c1 = arith.constant 1 : index
    %c0_129 = arith.constant 0 : index
    %c0_130 = arith.constant 0 : index
    %291 = vector.load %arg3[%c1, %c0_129, %c0_130] : memref<2x32x96xf32, #tpu.memory_space<vmem>>, vector<1x32x96xf32>
    %292 = vector.shape_cast %291 : vector<1x32x96xf32> to vector<32x96xf32>
    %cst_131 = arith.constant dense<0.000000e+00> : vector<8x96xf32>
    %293 = tpu.matmul %290, %292, %cst_131 {dimension_numbers = #tpu.dot_dimension_numbers<[1], [0], [0], [1], [0, 0, 1, 1], [], []>} : vector<8x32xf32>, vector<32x96xf32>, vector<8x96xf32> -> vector<8x96xf32>
    %c1_132 = arith.constant 1 : index
    %c0_133 = arith.constant 0 : index
    %c0_134 = arith.constant 0 : index
    %294 = vector.load %arg4[%c1_132, %c0_133, %c0_134] : memref<2x1x96xf32, #tpu.memory_space<vmem>>, vector<1x1x96xf32>
    %295 = vector.shape_cast %294 : vector<1x1x96xf32> to vector<1x96xf32>
    %296 = vector.broadcast %295 : vector<1x96xf32> to vector<8x96xf32>
    %297 = arith.addf %293, %296 : vector<8x96xf32>
    %298 = vector.extract_strided_slice %297 {offsets = [0, 0], sizes = [8, 32], strides = [1, 1]} : vector<8x96xf32> to vector<8x32xf32>
    %299 = vector.extract_strided_slice %297 {offsets = [0, 32], sizes = [8, 64], strides = [1, 1]} : vector<8x96xf32> to vector<8x64xf32>
    %c1_135 = arith.constant 1 : index
    %c0_136 = arith.constant 0 : index
    %c0_137 = arith.constant 0 : index
    %300 = vector.load %arg5[%c1_135, %c0_136, %c0_137] : memref<2x32x32xf32, #tpu.memory_space<vmem>>, vector<1x32x32xf32>
    %301 = vector.shape_cast %300 : vector<1x32x32xf32> to vector<32x32xf32>
    %c1_138 = arith.constant 1 : index
    %c0_139 = arith.constant 0 : index
    %c0_140 = arith.constant 0 : index
    %302 = vector.load %arg6[%c1_138, %c0_139, %c0_140] : memref<2x1x32xf32, #tpu.memory_space<vmem>>, vector<1x1x32xf32>
    %303 = vector.shape_cast %302 : vector<1x1x32xf32> to vector<1x32xf32>
    %304 = vector.extract_strided_slice %298 {offsets = [0, 0], sizes = [8, 8], strides = [1, 1]} : vector<8x32xf32> to vector<8x8xf32>
    %305 = vector.extract_strided_slice %299 {offsets = [0, 0], sizes = [8, 8], strides = [1, 1]} : vector<8x64xf32> to vector<8x8xf32>
    %306 = vector.extract_strided_slice %299 {offsets = [0, 32], sizes = [8, 8], strides = [1, 1]} : vector<8x64xf32> to vector<8x8xf32>
    %307 = tpu.transpose %305, [1, 0] : vector<8x8xf32> -> vector<8x8xf32>
    %cst_141 = arith.constant dense<0.000000e+00> : vector<8x8xf32>
    %308 = tpu.matmul %304, %307, %cst_141 {dimension_numbers = #tpu.dot_dimension_numbers<[1], [0], [0], [1], [0, 0, 1, 1], [], []>} : vector<8x8xf32>, vector<8x8xf32>, vector<8x8xf32> -> vector<8x8xf32>
    %cst_142 = arith.constant 0.353553385 : f32
    %309 = vector.broadcast %cst_142 : f32 to vector<8x8xf32>
    %310 = arith.mulf %308, %309 : vector<8x8xf32>
    %311 = arith.addf %310, %9 : vector<8x8xf32>
    %cst_143 = arith.constant dense<0xFF800000> : vector<8xf32>
    %312 = vector.multi_reduction <maximumf>, %311, %cst_143 [1] : vector<8x8xf32> to vector<8xf32>
    %313 = vector.shape_cast %312 : vector<8xf32> to vector<8x1xf32>
    %314 = vector.broadcast %313 : vector<8x1xf32> to vector<8x8xf32>
    %315 = arith.subf %311, %314 : vector<8x8xf32>
    %316 = math.exp %315 : vector<8x8xf32>
    %cst_144 = arith.constant dense<0.000000e+00> : vector<8xf32>
    %317 = vector.multi_reduction <add>, %316, %cst_144 [1] : vector<8x8xf32> to vector<8xf32>
    %318 = vector.shape_cast %317 : vector<8xf32> to vector<8x1xf32>
    %319 = tpu.reciprocal %318 {approx = true} : vector<8x1xf32> -> vector<8x1xf32>
    %320 = vector.broadcast %319 : vector<8x1xf32> to vector<8x8xf32>
    %321 = arith.mulf %316, %320 : vector<8x8xf32>
    %cst_145 = arith.constant dense<0.000000e+00> : vector<8x8xf32>
    %322 = tpu.matmul %321, %306, %cst_145 {dimension_numbers = #tpu.dot_dimension_numbers<[1], [0], [0], [1], [0, 0, 1, 1], [], []>} : vector<8x8xf32>, vector<8x8xf32>, vector<8x8xf32> -> vector<8x8xf32>
    %323 = vector.extract_strided_slice %298 {offsets = [0, 8], sizes = [8, 8], strides = [1, 1]} : vector<8x32xf32> to vector<8x8xf32>
    %324 = vector.extract_strided_slice %299 {offsets = [0, 8], sizes = [8, 8], strides = [1, 1]} : vector<8x64xf32> to vector<8x8xf32>
    %325 = vector.extract_strided_slice %299 {offsets = [0, 40], sizes = [8, 8], strides = [1, 1]} : vector<8x64xf32> to vector<8x8xf32>
    %326 = tpu.transpose %324, [1, 0] : vector<8x8xf32> -> vector<8x8xf32>
    %cst_146 = arith.constant dense<0.000000e+00> : vector<8x8xf32>
    %327 = tpu.matmul %323, %326, %cst_146 {dimension_numbers = #tpu.dot_dimension_numbers<[1], [0], [0], [1], [0, 0, 1, 1], [], []>} : vector<8x8xf32>, vector<8x8xf32>, vector<8x8xf32> -> vector<8x8xf32>
    %cst_147 = arith.constant 0.353553385 : f32
    %328 = vector.broadcast %cst_147 : f32 to vector<8x8xf32>
    %329 = arith.mulf %327, %328 : vector<8x8xf32>
    %330 = arith.addf %329, %9 : vector<8x8xf32>
    %cst_148 = arith.constant dense<0xFF800000> : vector<8xf32>
    %331 = vector.multi_reduction <maximumf>, %330, %cst_148 [1] : vector<8x8xf32> to vector<8xf32>
    %332 = vector.shape_cast %331 : vector<8xf32> to vector<8x1xf32>
    %333 = vector.broadcast %332 : vector<8x1xf32> to vector<8x8xf32>
    %334 = arith.subf %330, %333 : vector<8x8xf32>
    %335 = math.exp %334 : vector<8x8xf32>
    %cst_149 = arith.constant dense<0.000000e+00> : vector<8xf32>
    %336 = vector.multi_reduction <add>, %335, %cst_149 [1] : vector<8x8xf32> to vector<8xf32>
    %337 = vector.shape_cast %336 : vector<8xf32> to vector<8x1xf32>
    %338 = tpu.reciprocal %337 {approx = true} : vector<8x1xf32> -> vector<8x1xf32>
    %339 = vector.broadcast %338 : vector<8x1xf32> to vector<8x8xf32>
    %340 = arith.mulf %335, %339 : vector<8x8xf32>
    %cst_150 = arith.constant dense<0.000000e+00> : vector<8x8xf32>
    %341 = tpu.matmul %340, %325, %cst_150 {dimension_numbers = #tpu.dot_dimension_numbers<[1], [0], [0], [1], [0, 0, 1, 1], [], []>} : vector<8x8xf32>, vector<8x8xf32>, vector<8x8xf32> -> vector<8x8xf32>
    %342 = vector.extract_strided_slice %298 {offsets = [0, 16], sizes = [8, 8], strides = [1, 1]} : vector<8x32xf32> to vector<8x8xf32>
    %343 = vector.extract_strided_slice %299 {offsets = [0, 16], sizes = [8, 8], strides = [1, 1]} : vector<8x64xf32> to vector<8x8xf32>
    %344 = vector.extract_strided_slice %299 {offsets = [0, 48], sizes = [8, 8], strides = [1, 1]} : vector<8x64xf32> to vector<8x8xf32>
    %345 = tpu.transpose %343, [1, 0] : vector<8x8xf32> -> vector<8x8xf32>
    %cst_151 = arith.constant dense<0.000000e+00> : vector<8x8xf32>
    %346 = tpu.matmul %342, %345, %cst_151 {dimension_numbers = #tpu.dot_dimension_numbers<[1], [0], [0], [1], [0, 0, 1, 1], [], []>} : vector<8x8xf32>, vector<8x8xf32>, vector<8x8xf32> -> vector<8x8xf32>
    %cst_152 = arith.constant 0.353553385 : f32
    %347 = vector.broadcast %cst_152 : f32 to vector<8x8xf32>
    %348 = arith.mulf %346, %347 : vector<8x8xf32>
    %349 = arith.addf %348, %9 : vector<8x8xf32>
    %cst_153 = arith.constant dense<0xFF800000> : vector<8xf32>
    %350 = vector.multi_reduction <maximumf>, %349, %cst_153 [1] : vector<8x8xf32> to vector<8xf32>
    %351 = vector.shape_cast %350 : vector<8xf32> to vector<8x1xf32>
    %352 = vector.broadcast %351 : vector<8x1xf32> to vector<8x8xf32>
    %353 = arith.subf %349, %352 : vector<8x8xf32>
    %354 = math.exp %353 : vector<8x8xf32>
    %cst_154 = arith.constant dense<0.000000e+00> : vector<8xf32>
    %355 = vector.multi_reduction <add>, %354, %cst_154 [1] : vector<8x8xf32> to vector<8xf32>
    %356 = vector.shape_cast %355 : vector<8xf32> to vector<8x1xf32>
    %357 = tpu.reciprocal %356 {approx = true} : vector<8x1xf32> -> vector<8x1xf32>
    %358 = vector.broadcast %357 : vector<8x1xf32> to vector<8x8xf32>
    %359 = arith.mulf %354, %358 : vector<8x8xf32>
    %cst_155 = arith.constant dense<0.000000e+00> : vector<8x8xf32>
    %360 = tpu.matmul %359, %344, %cst_155 {dimension_numbers = #tpu.dot_dimension_numbers<[1], [0], [0], [1], [0, 0, 1, 1], [], []>} : vector<8x8xf32>, vector<8x8xf32>, vector<8x8xf32> -> vector<8x8xf32>
    %361 = vector.extract_strided_slice %298 {offsets = [0, 24], sizes = [8, 8], strides = [1, 1]} : vector<8x32xf32> to vector<8x8xf32>
    %362 = vector.extract_strided_slice %299 {offsets = [0, 24], sizes = [8, 8], strides = [1, 1]} : vector<8x64xf32> to vector<8x8xf32>
    %363 = vector.extract_strided_slice %299 {offsets = [0, 56], sizes = [8, 8], strides = [1, 1]} : vector<8x64xf32> to vector<8x8xf32>
    %364 = tpu.transpose %362, [1, 0] : vector<8x8xf32> -> vector<8x8xf32>
    %cst_156 = arith.constant dense<0.000000e+00> : vector<8x8xf32>
    %365 = tpu.matmul %361, %364, %cst_156 {dimension_numbers = #tpu.dot_dimension_numbers<[1], [0], [0], [1], [0, 0, 1, 1], [], []>} : vector<8x8xf32>, vector<8x8xf32>, vector<8x8xf32> -> vector<8x8xf32>
    %cst_157 = arith.constant 0.353553385 : f32
    %366 = vector.broadcast %cst_157 : f32 to vector<8x8xf32>
    %367 = arith.mulf %365, %366 : vector<8x8xf32>
    %368 = arith.addf %367, %9 : vector<8x8xf32>
    %cst_158 = arith.constant dense<0xFF800000> : vector<8xf32>
    %369 = vector.multi_reduction <maximumf>, %368, %cst_158 [1] : vector<8x8xf32> to vector<8xf32>
    %370 = vector.shape_cast %369 : vector<8xf32> to vector<8x1xf32>
    %371 = vector.broadcast %370 : vector<8x1xf32> to vector<8x8xf32>
    %372 = arith.subf %368, %371 : vector<8x8xf32>
    %373 = math.exp %372 : vector<8x8xf32>
    %cst_159 = arith.constant dense<0.000000e+00> : vector<8xf32>
    %374 = vector.multi_reduction <add>, %373, %cst_159 [1] : vector<8x8xf32> to vector<8xf32>
    %375 = vector.shape_cast %374 : vector<8xf32> to vector<8x1xf32>
    %376 = tpu.reciprocal %375 {approx = true} : vector<8x1xf32> -> vector<8x1xf32>
    %377 = vector.broadcast %376 : vector<8x1xf32> to vector<8x8xf32>
    %378 = arith.mulf %373, %377 : vector<8x8xf32>
    %cst_160 = arith.constant dense<0.000000e+00> : vector<8x8xf32>
    %379 = tpu.matmul %378, %363, %cst_160 {dimension_numbers = #tpu.dot_dimension_numbers<[1], [0], [0], [1], [0, 0, 1, 1], [], []>} : vector<8x8xf32>, vector<8x8xf32>, vector<8x8xf32> -> vector<8x8xf32>
    %380 = tpu.concatenate %322, %341, %360, %379 in 1 : vector<8x8xf32>, vector<8x8xf32>, vector<8x8xf32>, vector<8x8xf32> -> vector<8x32xf32>
    %cst_161 = arith.constant dense<0.000000e+00> : vector<8x32xf32>
    %381 = tpu.matmul %380, %301, %cst_161 {dimension_numbers = #tpu.dot_dimension_numbers<[1], [0], [0], [1], [0, 0, 1, 1], [], []>} : vector<8x32xf32>, vector<32x32xf32>, vector<8x32xf32> -> vector<8x32xf32>
    %382 = vector.broadcast %303 : vector<1x32xf32> to vector<8x32xf32>
    %383 = arith.addf %381, %382 : vector<8x32xf32>
    %c1_162 = arith.constant 1 : index
    %c0_163 = arith.constant 0 : index
    %c0_164 = arith.constant 0 : index
    %384 = vector.load %arg13[%c1_162, %c0_163, %c0_164] : memref<2x1x32xf32, #tpu.memory_space<vmem>>, vector<1x1x32xf32>
    %385 = vector.shape_cast %384 : vector<1x1x32xf32> to vector<1x32xf32>
    %c1_165 = arith.constant 1 : index
    %c0_166 = arith.constant 0 : index
    %c0_167 = arith.constant 0 : index
    %386 = vector.load %arg14[%c1_165, %c0_166, %c0_167] : memref<2x1x32xf32, #tpu.memory_space<vmem>>, vector<1x1x32xf32>
    %387 = vector.shape_cast %386 : vector<1x1x32xf32> to vector<1x32xf32>
    %388 = arith.addf %290, %383 : vector<8x32xf32>
    %cst_168 = arith.constant dense<0.000000e+00> : vector<8xf32>
    %389 = vector.multi_reduction <add>, %388, %cst_168 [1] : vector<8x32xf32> to vector<8xf32>
    %390 = vector.shape_cast %389 : vector<8xf32> to vector<8x1xf32>
    %cst_169 = arith.constant 3.200000e+01 : f32
    %391 = vector.broadcast %cst_169 : f32 to vector<8x1xf32>
    %392 = arith.divf %390, %391 : vector<8x1xf32>
    %393 = vector.broadcast %392 : vector<8x1xf32> to vector<8x32xf32>
    %394 = arith.subf %388, %393 : vector<8x32xf32>
    %395 = arith.mulf %394, %394 : vector<8x32xf32>
    %cst_170 = arith.constant dense<0.000000e+00> : vector<8xf32>
    %396 = vector.multi_reduction <add>, %395, %cst_170 [1] : vector<8x32xf32> to vector<8xf32>
    %397 = vector.shape_cast %396 : vector<8xf32> to vector<8x1xf32>
    %cst_171 = arith.constant 0.0322580636 : f32
    %398 = vector.broadcast %cst_171 : f32 to vector<8x1xf32>
    %399 = arith.mulf %397, %398 : vector<8x1xf32>
    %400 = math.sqrt %399 : vector<8x1xf32>
    %cst_172 = arith.constant 9.99999997E-7 : f32
    %401 = vector.broadcast %cst_172 : f32 to vector<8x1xf32>
    %402 = arith.addf %400, %401 : vector<8x1xf32>
    %403 = tpu.reciprocal %402 {approx = true} : vector<8x1xf32> -> vector<8x1xf32>
    %404 = vector.broadcast %403 : vector<8x1xf32> to vector<8x32xf32>
    %405 = arith.mulf %394, %404 : vector<8x32xf32>
    %406 = vector.broadcast %385 : vector<1x32xf32> to vector<8x32xf32>
    %407 = arith.mulf %406, %405 : vector<8x32xf32>
    %408 = vector.broadcast %387 : vector<1x32xf32> to vector<8x32xf32>
    %409 = arith.addf %407, %408 : vector<8x32xf32>
    %c1_173 = arith.constant 1 : index
    %c0_174 = arith.constant 0 : index
    %c0_175 = arith.constant 0 : index
    %410 = vector.load %arg7[%c1_173, %c0_174, %c0_175] : memref<2x32x32xf32, #tpu.memory_space<vmem>>, vector<1x32x32xf32>
    %411 = vector.shape_cast %410 : vector<1x32x32xf32> to vector<32x32xf32>
    %cst_176 = arith.constant dense<0.000000e+00> : vector<8x32xf32>
    %412 = tpu.matmul %409, %411, %cst_176 {dimension_numbers = #tpu.dot_dimension_numbers<[1], [0], [0], [1], [0, 0, 1, 1], [], []>} : vector<8x32xf32>, vector<32x32xf32>, vector<8x32xf32> -> vector<8x32xf32>
    %c1_177 = arith.constant 1 : index
    %c0_178 = arith.constant 0 : index
    %c0_179 = arith.constant 0 : index
    %413 = vector.load %arg8[%c1_177, %c0_178, %c0_179] : memref<2x1x32xf32, #tpu.memory_space<vmem>>, vector<1x1x32xf32>
    %414 = vector.shape_cast %413 : vector<1x1x32xf32> to vector<1x32xf32>
    %415 = vector.broadcast %414 : vector<1x32xf32> to vector<8x32xf32>
    %416 = arith.addf %412, %415 : vector<8x32xf32>
    %c1_180 = arith.constant 1 : index
    %c0_181 = arith.constant 0 : index
    %c0_182 = arith.constant 0 : index
    %417 = vector.load %arg9[%c1_180, %c0_181, %c0_182] : memref<2x32x64xf32, #tpu.memory_space<vmem>>, vector<1x32x64xf32>
    %418 = vector.shape_cast %417 : vector<1x32x64xf32> to vector<32x64xf32>
    %cst_183 = arith.constant dense<0.000000e+00> : vector<8x64xf32>
    %419 = tpu.matmul %3, %418, %cst_183 {dimension_numbers = #tpu.dot_dimension_numbers<[1], [0], [0], [1], [0, 0, 1, 1], [], []>} : vector<8x32xf32>, vector<32x64xf32>, vector<8x64xf32> -> vector<8x64xf32>
    %c1_184 = arith.constant 1 : index
    %c0_185 = arith.constant 0 : index
    %c0_186 = arith.constant 0 : index
    %420 = vector.load %arg10[%c1_184, %c0_185, %c0_186] : memref<2x1x64xf32, #tpu.memory_space<vmem>>, vector<1x1x64xf32>
    %421 = vector.shape_cast %420 : vector<1x1x64xf32> to vector<1x64xf32>
    %422 = vector.broadcast %421 : vector<1x64xf32> to vector<8x64xf32>
    %423 = arith.addf %419, %422 : vector<8x64xf32>
    %c1_187 = arith.constant 1 : index
    %c0_188 = arith.constant 0 : index
    %c0_189 = arith.constant 0 : index
    %424 = vector.load %arg11[%c1_187, %c0_188, %c0_189] : memref<2x32x32xf32, #tpu.memory_space<vmem>>, vector<1x32x32xf32>
    %425 = vector.shape_cast %424 : vector<1x32x32xf32> to vector<32x32xf32>
    %c1_190 = arith.constant 1 : index
    %c0_191 = arith.constant 0 : index
    %c0_192 = arith.constant 0 : index
    %426 = vector.load %arg12[%c1_190, %c0_191, %c0_192] : memref<2x1x32xf32, #tpu.memory_space<vmem>>, vector<1x1x32xf32>
    %427 = vector.shape_cast %426 : vector<1x1x32xf32> to vector<1x32xf32>
    %428 = vector.extract_strided_slice %416 {offsets = [0, 0], sizes = [8, 8], strides = [1, 1]} : vector<8x32xf32> to vector<8x8xf32>
    %429 = vector.extract_strided_slice %423 {offsets = [0, 0], sizes = [8, 8], strides = [1, 1]} : vector<8x64xf32> to vector<8x8xf32>
    %430 = vector.extract_strided_slice %423 {offsets = [0, 32], sizes = [8, 8], strides = [1, 1]} : vector<8x64xf32> to vector<8x8xf32>
    %431 = tpu.transpose %429, [1, 0] : vector<8x8xf32> -> vector<8x8xf32>
    %cst_193 = arith.constant dense<0.000000e+00> : vector<8x8xf32>
    %432 = tpu.matmul %428, %431, %cst_193 {dimension_numbers = #tpu.dot_dimension_numbers<[1], [0], [0], [1], [0, 0, 1, 1], [], []>} : vector<8x8xf32>, vector<8x8xf32>, vector<8x8xf32> -> vector<8x8xf32>
    %cst_194 = arith.constant 0.353553385 : f32
    %433 = vector.broadcast %cst_194 : f32 to vector<8x8xf32>
    %434 = arith.mulf %432, %433 : vector<8x8xf32>
    %cst_195 = arith.constant dense<0xFF800000> : vector<8xf32>
    %435 = vector.multi_reduction <maximumf>, %434, %cst_195 [1] : vector<8x8xf32> to vector<8xf32>
    %436 = vector.shape_cast %435 : vector<8xf32> to vector<8x1xf32>
    %437 = vector.broadcast %436 : vector<8x1xf32> to vector<8x8xf32>
    %438 = arith.subf %434, %437 : vector<8x8xf32>
    %439 = math.exp %438 : vector<8x8xf32>
    %cst_196 = arith.constant dense<0.000000e+00> : vector<8xf32>
    %440 = vector.multi_reduction <add>, %439, %cst_196 [1] : vector<8x8xf32> to vector<8xf32>
    %441 = vector.shape_cast %440 : vector<8xf32> to vector<8x1xf32>
    %442 = tpu.reciprocal %441 {approx = true} : vector<8x1xf32> -> vector<8x1xf32>
    %443 = vector.broadcast %442 : vector<8x1xf32> to vector<8x8xf32>
    %444 = arith.mulf %439, %443 : vector<8x8xf32>
    %cst_197 = arith.constant dense<0.000000e+00> : vector<8x8xf32>
    %445 = tpu.matmul %444, %430, %cst_197 {dimension_numbers = #tpu.dot_dimension_numbers<[1], [0], [0], [1], [0, 0, 1, 1], [], []>} : vector<8x8xf32>, vector<8x8xf32>, vector<8x8xf32> -> vector<8x8xf32>
    %446 = vector.extract_strided_slice %416 {offsets = [0, 8], sizes = [8, 8], strides = [1, 1]} : vector<8x32xf32> to vector<8x8xf32>
    %447 = vector.extract_strided_slice %423 {offsets = [0, 8], sizes = [8, 8], strides = [1, 1]} : vector<8x64xf32> to vector<8x8xf32>
    %448 = vector.extract_strided_slice %423 {offsets = [0, 40], sizes = [8, 8], strides = [1, 1]} : vector<8x64xf32> to vector<8x8xf32>
    %449 = tpu.transpose %447, [1, 0] : vector<8x8xf32> -> vector<8x8xf32>
    %cst_198 = arith.constant dense<0.000000e+00> : vector<8x8xf32>
    %450 = tpu.matmul %446, %449, %cst_198 {dimension_numbers = #tpu.dot_dimension_numbers<[1], [0], [0], [1], [0, 0, 1, 1], [], []>} : vector<8x8xf32>, vector<8x8xf32>, vector<8x8xf32> -> vector<8x8xf32>
    %cst_199 = arith.constant 0.353553385 : f32
    %451 = vector.broadcast %cst_199 : f32 to vector<8x8xf32>
    %452 = arith.mulf %450, %451 : vector<8x8xf32>
    %cst_200 = arith.constant dense<0xFF800000> : vector<8xf32>
    %453 = vector.multi_reduction <maximumf>, %452, %cst_200 [1] : vector<8x8xf32> to vector<8xf32>
    %454 = vector.shape_cast %453 : vector<8xf32> to vector<8x1xf32>
    %455 = vector.broadcast %454 : vector<8x1xf32> to vector<8x8xf32>
    %456 = arith.subf %452, %455 : vector<8x8xf32>
    %457 = math.exp %456 : vector<8x8xf32>
    %cst_201 = arith.constant dense<0.000000e+00> : vector<8xf32>
    %458 = vector.multi_reduction <add>, %457, %cst_201 [1] : vector<8x8xf32> to vector<8xf32>
    %459 = vector.shape_cast %458 : vector<8xf32> to vector<8x1xf32>
    %460 = tpu.reciprocal %459 {approx = true} : vector<8x1xf32> -> vector<8x1xf32>
    %461 = vector.broadcast %460 : vector<8x1xf32> to vector<8x8xf32>
    %462 = arith.mulf %457, %461 : vector<8x8xf32>
    %cst_202 = arith.constant dense<0.000000e+00> : vector<8x8xf32>
    %463 = tpu.matmul %462, %448, %cst_202 {dimension_numbers = #tpu.dot_dimension_numbers<[1], [0], [0], [1], [0, 0, 1, 1], [], []>} : vector<8x8xf32>, vector<8x8xf32>, vector<8x8xf32> -> vector<8x8xf32>
    %464 = vector.extract_strided_slice %416 {offsets = [0, 16], sizes = [8, 8], strides = [1, 1]} : vector<8x32xf32> to vector<8x8xf32>
    %465 = vector.extract_strided_slice %423 {offsets = [0, 16], sizes = [8, 8], strides = [1, 1]} : vector<8x64xf32> to vector<8x8xf32>
    %466 = vector.extract_strided_slice %423 {offsets = [0, 48], sizes = [8, 8], strides = [1, 1]} : vector<8x64xf32> to vector<8x8xf32>
    %467 = tpu.transpose %465, [1, 0] : vector<8x8xf32> -> vector<8x8xf32>
    %cst_203 = arith.constant dense<0.000000e+00> : vector<8x8xf32>
    %468 = tpu.matmul %464, %467, %cst_203 {dimension_numbers = #tpu.dot_dimension_numbers<[1], [0], [0], [1], [0, 0, 1, 1], [], []>} : vector<8x8xf32>, vector<8x8xf32>, vector<8x8xf32> -> vector<8x8xf32>
    %cst_204 = arith.constant 0.353553385 : f32
    %469 = vector.broadcast %cst_204 : f32 to vector<8x8xf32>
    %470 = arith.mulf %468, %469 : vector<8x8xf32>
    %cst_205 = arith.constant dense<0xFF800000> : vector<8xf32>
    %471 = vector.multi_reduction <maximumf>, %470, %cst_205 [1] : vector<8x8xf32> to vector<8xf32>
    %472 = vector.shape_cast %471 : vector<8xf32> to vector<8x1xf32>
    %473 = vector.broadcast %472 : vector<8x1xf32> to vector<8x8xf32>
    %474 = arith.subf %470, %473 : vector<8x8xf32>
    %475 = math.exp %474 : vector<8x8xf32>
    %cst_206 = arith.constant dense<0.000000e+00> : vector<8xf32>
    %476 = vector.multi_reduction <add>, %475, %cst_206 [1] : vector<8x8xf32> to vector<8xf32>
    %477 = vector.shape_cast %476 : vector<8xf32> to vector<8x1xf32>
    %478 = tpu.reciprocal %477 {approx = true} : vector<8x1xf32> -> vector<8x1xf32>
    %479 = vector.broadcast %478 : vector<8x1xf32> to vector<8x8xf32>
    %480 = arith.mulf %475, %479 : vector<8x8xf32>
    %cst_207 = arith.constant dense<0.000000e+00> : vector<8x8xf32>
    %481 = tpu.matmul %480, %466, %cst_207 {dimension_numbers = #tpu.dot_dimension_numbers<[1], [0], [0], [1], [0, 0, 1, 1], [], []>} : vector<8x8xf32>, vector<8x8xf32>, vector<8x8xf32> -> vector<8x8xf32>
    %482 = vector.extract_strided_slice %416 {offsets = [0, 24], sizes = [8, 8], strides = [1, 1]} : vector<8x32xf32> to vector<8x8xf32>
    %483 = vector.extract_strided_slice %423 {offsets = [0, 24], sizes = [8, 8], strides = [1, 1]} : vector<8x64xf32> to vector<8x8xf32>
    %484 = vector.extract_strided_slice %423 {offsets = [0, 56], sizes = [8, 8], strides = [1, 1]} : vector<8x64xf32> to vector<8x8xf32>
    %485 = tpu.transpose %483, [1, 0] : vector<8x8xf32> -> vector<8x8xf32>
    %cst_208 = arith.constant dense<0.000000e+00> : vector<8x8xf32>
    %486 = tpu.matmul %482, %485, %cst_208 {dimension_numbers = #tpu.dot_dimension_numbers<[1], [0], [0], [1], [0, 0, 1, 1], [], []>} : vector<8x8xf32>, vector<8x8xf32>, vector<8x8xf32> -> vector<8x8xf32>
    %cst_209 = arith.constant 0.353553385 : f32
    %487 = vector.broadcast %cst_209 : f32 to vector<8x8xf32>
    %488 = arith.mulf %486, %487 : vector<8x8xf32>
    %cst_210 = arith.constant dense<0xFF800000> : vector<8xf32>
    %489 = vector.multi_reduction <maximumf>, %488, %cst_210 [1] : vector<8x8xf32> to vector<8xf32>
    %490 = vector.shape_cast %489 : vector<8xf32> to vector<8x1xf32>
    %491 = vector.broadcast %490 : vector<8x1xf32> to vector<8x8xf32>
    %492 = arith.subf %488, %491 : vector<8x8xf32>
    %493 = math.exp %492 : vector<8x8xf32>
    %cst_211 = arith.constant dense<0.000000e+00> : vector<8xf32>
    %494 = vector.multi_reduction <add>, %493, %cst_211 [1] : vector<8x8xf32> to vector<8xf32>
    %495 = vector.shape_cast %494 : vector<8xf32> to vector<8x1xf32>
    %496 = tpu.reciprocal %495 {approx = true} : vector<8x1xf32> -> vector<8x1xf32>
    %497 = vector.broadcast %496 : vector<8x1xf32> to vector<8x8xf32>
    %498 = arith.mulf %493, %497 : vector<8x8xf32>
    %cst_212 = arith.constant dense<0.000000e+00> : vector<8x8xf32>
    %499 = tpu.matmul %498, %484, %cst_212 {dimension_numbers = #tpu.dot_dimension_numbers<[1], [0], [0], [1], [0, 0, 1, 1], [], []>} : vector<8x8xf32>, vector<8x8xf32>, vector<8x8xf32> -> vector<8x8xf32>
    %500 = tpu.concatenate %445, %463, %481, %499 in 1 : vector<8x8xf32>, vector<8x8xf32>, vector<8x8xf32>, vector<8x8xf32> -> vector<8x32xf32>
    %cst_213 = arith.constant dense<0.000000e+00> : vector<8x32xf32>
    %501 = tpu.matmul %500, %425, %cst_213 {dimension_numbers = #tpu.dot_dimension_numbers<[1], [0], [0], [1], [0, 0, 1, 1], [], []>} : vector<8x32xf32>, vector<32x32xf32>, vector<8x32xf32> -> vector<8x32xf32>
    %502 = vector.broadcast %427 : vector<1x32xf32> to vector<8x32xf32>
    %503 = arith.addf %501, %502 : vector<8x32xf32>
    %c1_214 = arith.constant 1 : index
    %c0_215 = arith.constant 0 : index
    %c0_216 = arith.constant 0 : index
    %504 = vector.load %arg15[%c1_214, %c0_215, %c0_216] : memref<2x1x32xf32, #tpu.memory_space<vmem>>, vector<1x1x32xf32>
    %505 = vector.shape_cast %504 : vector<1x1x32xf32> to vector<1x32xf32>
    %c1_217 = arith.constant 1 : index
    %c0_218 = arith.constant 0 : index
    %c0_219 = arith.constant 0 : index
    %506 = vector.load %arg16[%c1_217, %c0_218, %c0_219] : memref<2x1x32xf32, #tpu.memory_space<vmem>>, vector<1x1x32xf32>
    %507 = vector.shape_cast %506 : vector<1x1x32xf32> to vector<1x32xf32>
    %508 = arith.addf %409, %503 : vector<8x32xf32>
    %cst_220 = arith.constant dense<0.000000e+00> : vector<8xf32>
    %509 = vector.multi_reduction <add>, %508, %cst_220 [1] : vector<8x32xf32> to vector<8xf32>
    %510 = vector.shape_cast %509 : vector<8xf32> to vector<8x1xf32>
    %cst_221 = arith.constant 3.200000e+01 : f32
    %511 = vector.broadcast %cst_221 : f32 to vector<8x1xf32>
    %512 = arith.divf %510, %511 : vector<8x1xf32>
    %513 = vector.broadcast %512 : vector<8x1xf32> to vector<8x32xf32>
    %514 = arith.subf %508, %513 : vector<8x32xf32>
    %515 = arith.mulf %514, %514 : vector<8x32xf32>
    %cst_222 = arith.constant dense<0.000000e+00> : vector<8xf32>
    %516 = vector.multi_reduction <add>, %515, %cst_222 [1] : vector<8x32xf32> to vector<8xf32>
    %517 = vector.shape_cast %516 : vector<8xf32> to vector<8x1xf32>
    %cst_223 = arith.constant 0.0322580636 : f32
    %518 = vector.broadcast %cst_223 : f32 to vector<8x1xf32>
    %519 = arith.mulf %517, %518 : vector<8x1xf32>
    %520 = math.sqrt %519 : vector<8x1xf32>
    %cst_224 = arith.constant 9.99999997E-7 : f32
    %521 = vector.broadcast %cst_224 : f32 to vector<8x1xf32>
    %522 = arith.addf %520, %521 : vector<8x1xf32>
    %523 = tpu.reciprocal %522 {approx = true} : vector<8x1xf32> -> vector<8x1xf32>
    %524 = vector.broadcast %523 : vector<8x1xf32> to vector<8x32xf32>
    %525 = arith.mulf %514, %524 : vector<8x32xf32>
    %526 = vector.broadcast %505 : vector<1x32xf32> to vector<8x32xf32>
    %527 = arith.mulf %526, %525 : vector<8x32xf32>
    %528 = vector.broadcast %507 : vector<1x32xf32> to vector<8x32xf32>
    %529 = arith.addf %527, %528 : vector<8x32xf32>
    %c1_225 = arith.constant 1 : index
    %c0_226 = arith.constant 0 : index
    %c0_227 = arith.constant 0 : index
    %530 = vector.load %arg19[%c1_225, %c0_226, %c0_227] : memref<2x32x64xf32, #tpu.memory_space<vmem>>, vector<1x32x64xf32>
    %531 = vector.shape_cast %530 : vector<1x32x64xf32> to vector<32x64xf32>
    %cst_228 = arith.constant dense<0.000000e+00> : vector<8x64xf32>
    %532 = tpu.matmul %529, %531, %cst_228 {dimension_numbers = #tpu.dot_dimension_numbers<[1], [0], [0], [1], [0, 0, 1, 1], [], []>} : vector<8x32xf32>, vector<32x64xf32>, vector<8x64xf32> -> vector<8x64xf32>
    %c1_229 = arith.constant 1 : index
    %c0_230 = arith.constant 0 : index
    %c0_231 = arith.constant 0 : index
    %533 = vector.load %arg20[%c1_229, %c0_230, %c0_231] : memref<2x1x64xf32, #tpu.memory_space<vmem>>, vector<1x1x64xf32>
    %534 = vector.shape_cast %533 : vector<1x1x64xf32> to vector<1x64xf32>
    %535 = vector.broadcast %534 : vector<1x64xf32> to vector<8x64xf32>
    %536 = arith.addf %532, %535 : vector<8x64xf32>
    %cst_232 = arith.constant 0.000000e+00 : f32
    %537 = vector.broadcast %cst_232 : f32 to vector<8x64xf32>
    %538 = arith.maximumf %536, %537 : vector<8x64xf32>
    %c1_233 = arith.constant 1 : index
    %c0_234 = arith.constant 0 : index
    %c0_235 = arith.constant 0 : index
    %539 = vector.load %arg21[%c1_233, %c0_234, %c0_235] : memref<2x64x32xf32, #tpu.memory_space<vmem>>, vector<1x64x32xf32>
    %540 = vector.shape_cast %539 : vector<1x64x32xf32> to vector<64x32xf32>
    %cst_236 = arith.constant dense<0.000000e+00> : vector<8x32xf32>
    %541 = tpu.matmul %538, %540, %cst_236 {dimension_numbers = #tpu.dot_dimension_numbers<[1], [0], [0], [1], [0, 0, 1, 1], [], []>} : vector<8x64xf32>, vector<64x32xf32>, vector<8x32xf32> -> vector<8x32xf32>
    %c1_237 = arith.constant 1 : index
    %c0_238 = arith.constant 0 : index
    %c0_239 = arith.constant 0 : index
    %542 = vector.load %arg22[%c1_237, %c0_238, %c0_239] : memref<2x1x32xf32, #tpu.memory_space<vmem>>, vector<1x1x32xf32>
    %543 = vector.shape_cast %542 : vector<1x1x32xf32> to vector<1x32xf32>
    %544 = vector.broadcast %543 : vector<1x32xf32> to vector<8x32xf32>
    %545 = arith.addf %541, %544 : vector<8x32xf32>
    %c1_240 = arith.constant 1 : index
    %c0_241 = arith.constant 0 : index
    %c0_242 = arith.constant 0 : index
    %546 = vector.load %arg17[%c1_240, %c0_241, %c0_242] : memref<2x1x32xf32, #tpu.memory_space<vmem>>, vector<1x1x32xf32>
    %547 = vector.shape_cast %546 : vector<1x1x32xf32> to vector<1x32xf32>
    %c1_243 = arith.constant 1 : index
    %c0_244 = arith.constant 0 : index
    %c0_245 = arith.constant 0 : index
    %548 = vector.load %arg18[%c1_243, %c0_244, %c0_245] : memref<2x1x32xf32, #tpu.memory_space<vmem>>, vector<1x1x32xf32>
    %549 = vector.shape_cast %548 : vector<1x1x32xf32> to vector<1x32xf32>
    %550 = arith.addf %529, %545 : vector<8x32xf32>
    %cst_246 = arith.constant dense<0.000000e+00> : vector<8xf32>
    %551 = vector.multi_reduction <add>, %550, %cst_246 [1] : vector<8x32xf32> to vector<8xf32>
    %552 = vector.shape_cast %551 : vector<8xf32> to vector<8x1xf32>
    %cst_247 = arith.constant 3.200000e+01 : f32
    %553 = vector.broadcast %cst_247 : f32 to vector<8x1xf32>
    %554 = arith.divf %552, %553 : vector<8x1xf32>
    %555 = vector.broadcast %554 : vector<8x1xf32> to vector<8x32xf32>
    %556 = arith.subf %550, %555 : vector<8x32xf32>
    %557 = arith.mulf %556, %556 : vector<8x32xf32>
    %cst_248 = arith.constant dense<0.000000e+00> : vector<8xf32>
    %558 = vector.multi_reduction <add>, %557, %cst_248 [1] : vector<8x32xf32> to vector<8xf32>
    %559 = vector.shape_cast %558 : vector<8xf32> to vector<8x1xf32>
    %cst_249 = arith.constant 0.0322580636 : f32
    %560 = vector.broadcast %cst_249 : f32 to vector<8x1xf32>
    %561 = arith.mulf %559, %560 : vector<8x1xf32>
    %562 = math.sqrt %561 : vector<8x1xf32>
    %cst_250 = arith.constant 9.99999997E-7 : f32
    %563 = vector.broadcast %cst_250 : f32 to vector<8x1xf32>
    %564 = arith.addf %562, %563 : vector<8x1xf32>
    %565 = tpu.reciprocal %564 {approx = true} : vector<8x1xf32> -> vector<8x1xf32>
    %566 = vector.broadcast %565 : vector<8x1xf32> to vector<8x32xf32>
    %567 = arith.mulf %556, %566 : vector<8x32xf32>
    %568 = vector.broadcast %547 : vector<1x32xf32> to vector<8x32xf32>
    %569 = arith.mulf %568, %567 : vector<8x32xf32>
    %570 = vector.broadcast %549 : vector<1x32xf32> to vector<8x32xf32>
    %571 = arith.addf %569, %570 : vector<8x32xf32>
    %c0_251 = arith.constant 0 : index
    %c0_252 = arith.constant 0 : index
    %572 = vector.load %arg23[%c0_251, %c0_252] : memref<8x32xf32, #tpu.memory_space<vmem>>, vector<8x32xf32>
    tpu.vector_store %arg23[%c0_251, %c0_252], %571 {strides = array<i32>} : memref<8x32xf32, #tpu.memory_space<vmem>>, vector<8x32xf32>,
    return
  }
}

</mosaic_0001>

<bundles_post_ra>
// kernel: decoder_forward.1
= control target key start
LH: loop header
LB: loop body
LE: loop exit
PB: predicated region body
PF: predicated region fallthrough
CT: control target
= control target key end

     0   :  { %s3299_s0 = inlined_call_operand.vmem [shape: f32[8,32], index: 0, kind: input, shape index: {}]   ;;  %s3300_s1 = inlined_call_operand.vmem [shape: f32[8,32], index: 1, kind: input, shape index: {}]   ;;  %s3301_s2 = inlined_call_operand.vmem [shape: f32[8,32], index: 2, kind: input, shape index: {}]   ;;  %s3302_s3 = inlined_call_operand.vmem [shape: f32[2,32,96], index: 3, kind: input, shape index: {}]   ;;  %s3303_s4 = inlined_call_operand.vmem [shape: f32[2,1,96], index: 4, kind: input, shape index: {}]   ;;  %s3304_s5 = inlined_call_operand.vmem [shape: f32[2,32,32], index: 5, kind: input, shape index: {}]   ;;  %s3305_s6 = inlined_call_operand.vmem [shape: f32[2,1,32], index: 6, kind: input, shape index: {}]   ;;  %s3306_s7 = inlined_call_operand.vmem [shape: f32[2,32,32], index: 7, kind: input, shape index: {}]   ;;  %s3307_s8 = inlined_call_operand.vmem [shape: f32[2,1,32], index: 8, kind: input, shape index: {}]   ;;  %s3308_s9 = inlined_call_operand.hbm [shape: f32[2,32,64], index: 9, kind: input, shape index: {}]   ;;  %s3309_s10 = inlined_call_operand.hbm [shape: f32[2,1,64], index: 10, kind: input, shape index: {}]   ;;  %s3310_s11 = inlined_call_operand.hbm [shape: f32[2,32,32], index: 11, kind: input, shape index: {}]   ;;  %s3311_s12 = inlined_call_operand.hbm [shape: f32[2,1,32], index: 12, kind: input, shape index: {}]   ;;  %s3312_s13 = inlined_call_operand.vmem [shape: f32[2,1,32], index: 13, kind: input, shape index: {}]   ;;  %s3313_s14 = inlined_call_operand.hbm [shape: f32[2,1,32], index: 14, kind: input, shape index: {}]   ;;  %s3314_s15 = inlined_call_operand.hbm [shape: f32[2,1,32], index: 15, kind: input, shape index: {}]   ;;  %s3315_s16 = inlined_call_operand.hbm [shape: f32[2,1,32], index: 16, kind: input, shape index: {}]   ;;  %s3316_s17 = inlined_call_operand.hbm [shape: f32[2,1,32], index: 17, kind: input, shape index: {}]   ;;  %s3317_s18 = inlined_call_operand.hbm [shape: f32[2,1,32], index: 18, kind: input, shape index: {}]   ;;  %s3318_s19 = inlined_call_operand.hbm [shape: f32[2,32,64], index: 19, kind: input, shape index: {}]   ;;  %s3319_s20 = inlined_call_operand.hbm [shape: f32[2,1,64], index: 20, kind: input, shape index: {}]   ;;  %s3320_s21 = inlined_call_operand.vmem [shape: f32[2,64,32], index: 21, kind: input, shape index: {}]   ;;  %s3321_s22 = inlined_call_operand.hbm [shape: f32[2,1,32], index: 22, kind: input, shape index: {}]   ;;  %s3322_s23 = inlined_call_operand.hbm [shape: f32[8,32], index: 23, kind: output, shape index: {}]  }
   0x1   :  { %3329 = sst [smem:[#allocation31_spill]] %s3299_s0 }
   0x2   :  { %3330 = sst [smem:[#allocation32_spill]] %s3300_s1 }
   0x3   :  { %3331 = sst [smem:[#allocation33_spill]] %s3301_s2 }
   0x4   :  { %3332 = sst [smem:[#allocation34_spill]] %s3302_s3 }
   0x5   :  { %3333 = sst [smem:[#allocation35_spill]] %s3303_s4 }
   0x6   :  { %3334 = sst [smem:[#allocation36_spill]] %s3304_s5 }
   0x7   :  { %3335 = sst [smem:[#allocation37_spill]] %s3305_s6 }
   0x8   :  { %3336 = sst [smem:[#allocation38_spill]] %s3306_s7 }
   0x9   :  { %28 = vsyncpa [#allocation3], 0 }
   0xa   :  { %29 = vsyncpa [#allocation6], 0 }
   0xb   :  { %30 = vsyncpa [#allocation9], 0 }
   0xc   :  { %31 = vsyncpa [#allocation12], 0 }
   0xd   :  { %32 = vsyncpa [#allocation15], 0 }
   0xe   :  { %33 = vsyncpa [#allocation18], 0 }
   0xf   :  { %34 = vsyncpa [#allocation21], 0  ;;  %s71_s24 = sshll.u32 %s3309_s10, 4  ;;  %s72_s24 = int_to_ptr.hbm [resolvable:$true] %s71_s24 }
  0x10   :  { %35 = vsyncpa [#allocation4], 0  ;;  %s2664_s25 = smov [#allocation5]   ;;  %s97_s2 = sshll.u32 %s3311_s12, 4  ;;  %s98_s2 = int_to_ptr.hbm [resolvable:$true] %s97_s2 }
  0x11   :  { %s73_s5 = sshll.u32 %s2664_s25, 4  ;;  %s2665_s6 = smov 16   ;;  %s74_s5 = int_to_ptr.vmem [resolvable:$true] %s73_s5 }
  0x12   :  { %s2666_s27 = smov 1   ;;  %s2667_s7 = smov [#allocation8]  }
  0x13   :  { %79 = dma.hbm_to_vmem [thread:$0]  %s72_s24, 32, %s74_s5, [#allocation6], %s2665_s6, %s2665_s6, %s2666_s27  }
  0x14   :  { %s99_s28 = sshll.u32 %s2667_s7, 4  ;;  %s125_s3 = sshll.u32 %s3314_s15, 4  ;;  %s100_s28 = int_to_ptr.vmem [resolvable:$true] %s99_s28  ;;  %s126_s3 = int_to_ptr.hbm [resolvable:$true] %s125_s3 }
  0x15   :  { %105 = dma.hbm_to_vmem [thread:$0]  %s98_s2, 32, %s100_s28, [#allocation9], %s2665_s6, %s2665_s6, %s2666_s27  }
  0x16   :  { %s151_s4 = sshll.u32 %s3316_s17, 4  ;;  %s2668_s30 = smov [#allocation11]   ;;  %s152_s4 = int_to_ptr.hbm [resolvable:$true] %s151_s4 }
  0x17   :  { %s127_s25 = sshll.u32 %s2668_s30, 4  ;;  %s2669_s24 = smov [#allocation14]   ;;  %s128_s25 = int_to_ptr.vmem [resolvable:$true] %s127_s25 }
  0x18   :  { %133 = dma.hbm_to_vmem [thread:$0]  %s126_s3, 32, %s128_s25, [#allocation12], %s2665_s6, %s2665_s6, %s2666_s27  }
  0x19   :  { %s153_s15 = sshll.u32 %s2669_s24, 4  ;;  %s177_s26 = sshll.u32 %s3318_s19, 4  ;;  %s154_s15 = int_to_ptr.vmem [resolvable:$true] %s153_s15  ;;  %s178_s26 = int_to_ptr.hbm [resolvable:$true] %s177_s26 }
  0x1a   :  { %159 = dma.hbm_to_vmem [thread:$0]  %s152_s4, 32, %s154_s15, [#allocation15], %s2665_s6, %s2665_s6, %s2666_s27  }
  0x1b   :  { %s2670_s17 = smov [#allocation17]   ;;  %s58_s29 = sshll.u32 %s3308_s9, 4  ;;  %s59_s29 = int_to_ptr.hbm [resolvable:$true] %s58_s29 }
  0x1c   :  { %s179_s2 = sshll.u32 %s2670_s17, 4  ;;  %s2671_s10 = smov 128   ;;  %s180_s2 = int_to_ptr.vmem [resolvable:$true] %s179_s2 }
  0x1d   :  { %s2672_s3 = smov 8   ;;  %s2673_s12 = smov [#allocation2]  }
  0x1e   :  { %185 = dma.hbm_to_vmem [thread:$0]  %s178_s26, 1024, %s180_s2, [#allocation18], %s2671_s10, %s2671_s10, %s2672_s3  }
  0x1f   :  { %s60_s0 = sshll.u32 %s2673_s12, 4  ;;  %s84_s25 = sshll.u32 %s3310_s11, 4  ;;  %s61_s0 = int_to_ptr.vmem [resolvable:$true] %s60_s0  ;;  %s85_s25 = int_to_ptr.hbm [resolvable:$true] %s84_s25 }
  0x20   :  { %66 = dma.hbm_to_vmem [thread:$0]  %s59_s29, 1024, %s61_s0, [#allocation3], %s2671_s10, %s2671_s10, %s2672_s3  }
  0x21   :  { %s112_s15 = sshll.u32 %s3313_s14, 4  ;;  %s2674_s9 = smov [#allocation7]   ;;  %s113_s15 = int_to_ptr.hbm [resolvable:$true] %s112_s15 }
  0x22   :  { %s86_s5 = sshll.u32 %s2674_s9, 4  ;;  %s2675_s1 = smov [#allocation10]   ;;  %s87_s5 = int_to_ptr.vmem [resolvable:$true] %s86_s5 }
  0x23   :  { %92 = dma.hbm_to_vmem [thread:$0]  %s85_s25, 1024, %s87_s5, [#allocation6], %s2671_s10, %s2671_s10, %s2672_s3  }
  0x24   :  { %s114_s26 = sshll.u32 %s2675_s1, 4  ;;  %s138_s11 = sshll.u32 %s3315_s16, 4  ;;  %s115_s26 = int_to_ptr.vmem [resolvable:$true] %s114_s26  ;;  %s139_s11 = int_to_ptr.hbm [resolvable:$true] %s138_s11 }
  0x25   :  { %120 = dma.hbm_to_vmem [thread:$0]  %s113_s15, 32, %s115_s26, [#allocation9], %s2665_s6, %s2665_s6, %s2666_s27  }
  0x26   :  { %s164_s28 = sshll.u32 %s3317_s18, 4  ;;  %s2676_s29 = smov [#allocation13]   ;;  %s165_s28 = int_to_ptr.hbm [resolvable:$true] %s164_s28 }
  0x27   :  { %s140_s12 = sshll.u32 %s2676_s29, 4  ;;  %s2677_s10 = smov [#allocation16]   ;;  %s141_s12 = int_to_ptr.vmem [resolvable:$true] %s140_s12 }
  0x28   :  { %146 = dma.hbm_to_vmem [thread:$0]  %s139_s11, 32, %s141_s12, [#allocation12], %s2665_s6, %s2665_s6, %s2666_s27  }
  0x29   :  { %s166_s16 = sshll.u32 %s2677_s10, 4  ;;  %s190_s30 = sshll.u32 %s3319_s20, 4  ;;  %s167_s16 = int_to_ptr.vmem [resolvable:$true] %s166_s16  ;;  %s191_s30 = int_to_ptr.hbm [resolvable:$true] %s190_s30 }
  0x2a   :  { %172 = dma.hbm_to_vmem [thread:$0]  %s165_s28, 32, %s167_s16, [#allocation15], %s2665_s6, %s2665_s6, %s2666_s27  }
  0x2b   :  { %s205_s19 = sshll.u32 %s3321_s22, 4  ;;  %s2678_s24 = smov [#allocation19]   ;;  %s206_s19 = int_to_ptr.hbm [resolvable:$true] %s205_s19 }
  0x2c   :  { %s192_s15 = sshll.u32 %s2678_s24, 4  ;;  %s2679_s9 = smov [#allocation20]   ;;  %s193_s15 = int_to_ptr.vmem [resolvable:$true] %s192_s15 }
  0x2d   :  { %198 = dma.hbm_to_vmem [thread:$0]  %s191_s30, 32, %s193_s15, [#allocation18], %s2665_s6, %s2665_s6, %s2666_s27  }
  0x2e   :  { %s207_s20 = sshll.u32 %s2679_s9, 4  ;;  %s208_s20 = int_to_ptr.vmem [resolvable:$true] %s207_s20 }
  0x2f   :  { %213 = dma.hbm_to_vmem [thread:$0]  %s206_s19, 32, %s208_s20, [#allocation21], %s2665_s6, %s2665_s6, %s2666_s27  }
  0x30   :  { %2648 = dma.done.wait [#allocation3], 1024  }
  0x31   :  { %2649 = vsyncadd [#allocation3], 4294966272 }
  0x32   :  { %2650 = dma.done.wait [#allocation6], 1056  }
  0x33   :  { %2651 = vsyncadd [#allocation6], 4294966240 }
  0x34   :  { %2652 = dma.done.wait [#allocation9], 64  }
  0x35   :  { %2653 = vsyncadd [#allocation9], 4294967232 }
  0x36   :  { %2654 = dma.done.wait [#allocation12], 64  }
  0x37   :  { %2655 = vsyncadd [#allocation12], 4294967232 }
  0x38   :  { %2656 = dma.done.wait [#allocation15], 64  }
  0x39   :  { %2657 = vsyncadd [#allocation15], 4294967232 }
  0x3a   :  { %2658 = dma.done.wait [#allocation18], 1056  }
  0x3b   :  { %2659 = vsyncadd [#allocation18], 4294966240 }
  0x3c   :  { %2660 = dma.done.wait [#allocation21], 32  }
  0x3d   :  { %2661 = vsyncadd [#allocation21], 4294967264  ;;  %s3337_s1 = sld [smem:[#allocation34_spill]]  ;;  %vm280_vm0 = vcmask 261120   ;;  %s2680_s18 = smov 72   ;;  %vm312_vm1 = vcmask 64512   ;;  %v266_v17 = vlaneseq }
  0x3e   :  { %s3338_s14 = sld [smem:[#allocation31_spill]]  ;;  %s2681_s25 = smov 120   ;;  %v2687_v21 = vmov 0.0   ;;  %vm590_vm3 = vcmask 130048   ;;  %vm592_vm4 = vcmask 195584   ;;  %vm1113_vm10 = vcmask 523264  }
  0x3f   :  { %s3339_s12 = sld [smem:[#allocation33_spill]]  ;;  %s2682_s19 = smov 96   ;;  %v267_v18 = vshrl.u32 %v266_v17, 7  ;;  %v269_v19 = vand.u32 127, %v266_v17 }
  0x40   :  { %s3340_s30 = sld [smem:[#allocation35_spill]]  ;;  %s2683_s24 = smov 112  }
  0x41   :  { %s2684_s15 = smov 80   ;;  %s2685_s9 = smov 88   ;;  %vm270_vm2 = vcmp.gt.s32.totalorder %v269_v19, %v267_v18 }
  0x42   :  { %s2686_s20 = smov 104   ;;  %v2931_v22 = vsel %vm270_vm2, -1e+30, %v2687_v21  ;;  %s2688_s22 = smov 64  }
  0x43   :  { %v275_v0 = vld [vmem:[%s3337_s1 + $0x18] sm:$0xff]  ;;  %v274_v1 = vld [vmem:[%s3337_s1 + $0x10] sm:$0xff]  ;;  %v273_v2 = vld [vmem:[%s3337_s1 + $0x8] sm:$0xff]  ;;  %s2689_s5 = smov 40   ;;  %s2690_s26 = smov 56  }
  0x44   :  { %296 = vmatpush.msra.mxu0 %v275_v0  ;;  %v262_v3 = vld [vmem:[%s3338_s14] sm:$0xff]  ;;  %s3328_s27 = smov 48   ;;  %s2692_s17 = smov 24  }
  0x45   :  { %v263_v4 = vld [vmem:[%s3339_s12] sm:$0xff]  ;;  %s3341_s7 = sld [smem:[#allocation36_spill]] }
  0x46   :  { %v272_v5 = vld [vmem:[%s3337_s1] sm:$0xff]  ;;  %297 = vmatpush.msra.mxu0 %v274_v1  ;;  %v2899_v6 = vadd.f32 %v263_v4, %v262_v3  ;;  %s3342_s2 = sld [smem:[#allocation37_spill]] }
  0x47   :  { %v2220_v7 = vld [vmem:[%s3340_s30] ss:$0 sm:$0xff]  ;;  %s3343_s28 = sld [smem:[#allocation32_spill]] }
  0x48   :  { %298 = vmatpush.msra.mxu0 %v273_v2  ;;  %s3344_s10 = sld [smem:[#allocation38_spill]] }
  0x4a   :  { %299 = vmatpush.msra.mxu0 %v272_v5 }
  0x4b   :  { %2103 = vmatmul.msk.f32.vlgmr.msra.gmra.mxu0 %vm280_vm0, %v2899_v6  ;;  %v305_v17 = vld [vmem:[%s3341_s7 + $0x8] sm:$0xff]  ;;  %v304_v18 = vld [vmem:[%s3341_s7] sm:$0xff] }
  0xc8   :  { %v301_v8 = vpop.f32.mrf.mxu0 }
  0xc9   :  { %v2906_v9 = vadd.f32 %v2220_v7, %v301_v8 }
  0xcb   :  { %512 = vrot.lane.b32.xlu2 %v2906_v9, %s2680_s18  ;;  %376 = vrot.lane.b32.xlu1 %v2906_v9, %s2681_s25 }
  0xcc   :  { %310 = vrot.lane.b32.xlu0 %v2906_v9, %s2682_s19 }
  0xd3   :  { %443 = vrot.lane.b32.xlu2 %v2906_v9, %s2683_s24  ;;  %445 = vrot.lane.b32.xlu1 %v2906_v9, %s2684_s15 }
  0xd4   :  { %378 = vrot.lane.b32.xlu0 %v2906_v9, %s2685_s9 }
  0xdc   :  { %510 = vrot.lane.b32.xlu0 %v2906_v9, %s2686_s20 }
 0x125   :  { %v513_v12 = vpop.permute.xlu2 %512 }
 0x12d   :  { %v444_v15 = vpop.permute.xlu2 %443 }
 0x13d   :  { %v377_v10 = vpop.permute.xlu1 %376 }
 0x13e   :  { %v311_v11 = vpop.permute.xlu0 %310 }
 0x13f   :  { %2104 = vmatpush.xpose.msk.msra.mxu1 %vm312_vm1, %v311_v11 }
 0x142   :  { %2105 = vmatmul.msk.f32.vlgmr.msra.gmra.mxu1 %vm312_vm1, %v2906_v9 }
 0x145   :  { %v446_v13 = vpop.permute.xlu1 %445 }
 0x146   :  { %v379_v14 = vpop.permute.xlu0 %378  ;;  %2110 = vmatpush.xpose.msk.msrb.mxu1 %vm312_vm1, %v446_v13 }
 0x147   :  { %2107 = vmatpush.xpose.msk.msrb.mxu0 %vm312_vm1, %v379_v14 }
 0x14a   :  { %2108 = vmatmul.msk.f32.vlgmr.msrb.gmra.mxu0 %vm312_vm1, %v377_v10  ;;  %2111 = vmatmul.msk.f32.vlgmr.msrb.gmra.mxu1 %vm312_vm1, %v444_v15  ;;  %v307_v15 = vld [vmem:[%s3341_s7 + $0x18] sm:$0xff] }
 0x14b   :  { %2113 = vmatpush.xpose.msk.msra.mxu0 %vm312_vm1, %v513_v12  ;;  %612 = vmatpush.msra.mxu1 %v307_v15 }
 0x14e   :  { %v511_v16 = vpop.permute.xlu0 %510 }
 0x152   :  { %2114 = vmatmul.msk.f32.vlgmr.msra.gmra.mxu0 %vm312_vm1, %v511_v16  ;;  %v306_v16 = vld [vmem:[%s3341_s7 + $0x10] sm:$0xff] }
 0x153   :  { %613 = vmatpush.msra.mxu1 %v306_v16 }
 0x155   :  { %614 = vmatpush.msra.mxu1 %v305_v17 }
 0x157   :  { %615 = vmatpush.msra.mxu1 %v304_v18 }
 0x1bf   :  { %v334_v20 = vpop.f32.mrf.mxu1 }
 0x1c0   :  { %v337_v23 = vmul.f32 0.35355338, %v334_v20 }
 0x1c2   :  { %v338_v24 = vadd.f32 %v337_v23, %v2931_v22 }
 0x1c4   :  { %v339_v25 = vsel %vm312_vm1, %v338_v24, -inf }
 0x1c5   :  { %340 = vmax.xlane.f32.xlu1 %v339_v25 }
 0x1c7   :  { %v401_v26 = vpop.f32.mrf.mxu0  ;;  %v468_v27 = vpop.f32.mrf.mxu1 }
 0x1c8   :  { %v404_v28 = vmul.f32 0.35355338, %v401_v26  ;;  %v471_v29 = vmul.f32 0.35355338, %v468_v27  ;;  %v2221_v26 = vld [vmem:[%s3342_s2] ss:$0 sm:$0xff] }
 0x1ca   :  { %v472_v30 = vadd.f32 %v471_v29, %v2931_v22  ;;  %v405_v31 = vadd.f32 %v404_v28, %v2931_v22 }
 0x1cc   :  { %v473_v32 = vsel %vm312_vm1, %v472_v30, -inf  ;;  %v406_v33 = vsel %vm312_vm1, %v405_v31, -inf }
 0x1cd   :  { %474 = vmax.xlane.f32.xlu0 %v473_v32  ;;  %407 = vmax.xlane.f32.xlu2 %v406_v33  ;;  %v697_v32 = vld [vmem:[#allocation2 + $0x18] sm:$0xff]  ;;  %v696_v33 = vld [vmem:[#allocation2 + $0x10] sm:$0xff] }
 0x1ce   :  { %717 = vmatpush.msrb.mxu0 %v697_v32 }
 0x1cf   :  { %v535_v34 = vpop.f32.mrf.mxu0 }
 0x1d0   :  { %v538_v35 = vmul.f32 0.35355338, %v535_v34  ;;  %718 = vmatpush.msrb.mxu0 %v696_v33 }
 0x1d2   :  { %v539_v36 = vadd.f32 %v538_v35, %v2931_v22 }
 0x1d4   :  { %v540_v37 = vsel %vm312_vm1, %v539_v36, -inf }
 0x1d5   :  { %541 = vmax.xlane.f32.xlu2 %v540_v37 }
 0x1e1   :  { %350 = vrot.lane.b32.xlu0 %v2906_v9, %s2688_s22 }
 0x1e9   :  { %551 = vrot.lane.b32.xlu0 %v2906_v9, %s2689_s5 }
 0x238   :  { %v341_v38 = vpop.xlane.xlu1 %340 }
 0x239   :  { %v342_v39 = vsub.f32 %v338_v24, %v341_v38 }
 0x23b   :  { %v343_v40 = vmul.f32 1.442695, %v342_v39 }
 0x23d   :  { %2246 = vpow2.f32 %v343_v40 }
 0x240   :  { %v408_v41 = vpop.xlane.xlu2 %407  ;;  %v475_v42 = vpop.xlane.xlu0 %474 }
 0x241   :  { %v409_v43 = vsub.f32 %v405_v31, %v408_v41  ;;  %v476_v44 = vsub.f32 %v472_v30, %v475_v42  ;;  %v2693_v31 = vmov 32.0  }
 0x243   :  { %v2247_v45 = vpop.eup %2246  ;;  %v410_v46 = vmul.f32 1.442695, %v409_v43  ;;  %v477_v47 = vmul.f32 1.442695, %v476_v44  ;;  %v695_v44 = vld [vmem:[#allocation2 + $0x8] sm:$0xff] }
 0x244   :  { %v345_v48 = vsel %vm312_vm1, %v2247_v45, 0.0  ;;  %719 = vmatpush.msrb.mxu0 %v695_v44 }
 0x245   :  { %2248 = vpow2.f32 %v410_v46  ;;  %346 = vadd.xlane.f32.xlu1 %v345_v48  ;;  %v2988_v46 = vld [vmem:[%s3343_s28] sm:$0xff]  ;;  %v665_v48 = vld [vmem:[%s3344_s10 + $0x10] sm:$0xff] }
 0x246   :  { %2250 = vpow2.f32 %v477_v47  ;;  %v666_v47 = vld [vmem:[%s3344_s10 + $0x18] sm:$0xff] }
 0x248   :  { %v542_v49 = vpop.xlane.xlu2 %541 }
 0x249   :  { %v543_v50 = vsub.f32 %v539_v36, %v542_v49  ;;  %v664_v49 = vld [vmem:[%s3344_s10 + $0x8] sm:$0xff] }
 0x24b   :  { %v2249_v51 = vpop.eup %2248  ;;  %v544_v52 = vmul.f32 1.442695, %v543_v50  ;;  %v663_v50 = vld [vmem:[%s3344_s10] sm:$0xff] }
 0x24c   :  { %v2251_v53 = vpop.eup %2250  ;;  %v412_v54 = vsel %vm312_vm1, %v2249_v51, 0.0 }
 0x24d   :  { %2252 = vpow2.f32 %v544_v52  ;;  %413 = vadd.xlane.f32.xlu2 %v412_v54  ;;  %v479_v55 = vsel %vm312_vm1, %v2251_v53, 0.0 }
 0x24e   :  { %480 = vadd.xlane.f32.xlu1 %v479_v55 }
 0x253   :  { %v2253_v56 = vpop.eup %2252  ;;  %v351_v57 = vpop.permute.xlu0 %350 }
 0x254   :  { %371 = vmatpush.msra.mxu2 %v351_v57  ;;  %v546_v58 = vsel %vm312_vm1, %v2253_v56, 0.0 }
 0x255   :  { %547 = vadd.xlane.f32.xlu2 %v546_v58 }
 0x25b   :  { %v552_v8 = vpop.permute.xlu0 %551 }
 0x267   :  { %417 = vrot.lane.b32.xlu1 %v2906_v9, %s2690_s26 }
 0x26d   :  { %484 = vrot.lane.b32.xlu2 %v2906_v9, %s3328_s27  ;;  %s2087_s27 = sshll.u32 %s3322_s23, 4  ;;  %s2088_s27 = int_to_ptr.hbm [resolvable:$true] %s2087_s27 }
 0x2b8   :  { %v347_v59 = vpop.xlane.xlu1 %346 }
 0x2b9   :  { %2254 = vrcp.f32 %v347_v59 }
 0x2bf   :  { %v2255_v60 = vpop.eup %2254 }
 0x2c0   :  { %v414_v61 = vpop.xlane.xlu2 %413  ;;  %v349_v62 = vmul.f32 %v2255_v60, %v2247_v45  ;;  %v694_v45 = vld [vmem:[#allocation2] sm:$0xff] }
 0x2c1   :  { %v481_v63 = vpop.xlane.xlu1 %480  ;;  %720 = vmatpush.msrb.mxu0 %v694_v45 }
 0x2c2   :  { %2106 = vmatmul.msk.f32.vlgmr.msra.gmra.mxu2 %vm312_vm1, %v349_v62  ;;  %2256 = vrcp.f32 %v481_v63  ;;  %2118 = vmatmul.msk.f32.vlgmr.msrb.gmra.mxu0 %vm280_vm0, %v2988_v46 }
 0x2c3   :  { %2258 = vrcp.f32 %v414_v61 }
 0x2c8   :  { %v548_v0 = vpop.xlane.xlu2 %547  ;;  %v2257_v1 = vpop.eup %2256 }
 0x2c9   :  { %v483_v3 = vmul.f32 %v2257_v1, %v2251_v53  ;;  %v2259_v4 = vpop.eup %2258  ;;  %2260 = vrcp.f32 %v548_v0  ;;  %v2222_v0 = vld [vmem:[%s3312_s13] ss:$0 sm:$0xff] }
 0x2ca   :  { %v416_v7 = vmul.f32 %v2259_v4, %v2249_v51  ;;  %2262 = vrcp.f32 %v2693_v31 }
 0x2cf   :  { %v2261_v9 = vpop.eup %2260 }
 0x2d0   :  { %v485_v2 = vpop.permute.xlu2 %484  ;;  %v550_v10 = vmul.f32 %v2261_v9, %v2253_v56  ;;  %v2263_v34 = vpop.eup %2262 }
 0x2d1   :  { %505 = vmatpush.msra.mxu3 %v485_v2  ;;  %v627_v35 = vmul.f32 32.0, %v2263_v34  ;;  %vm631_vm5 = vweird.f32 %v2263_v34 }
 0x2d2   :  { %2112 = vmatmul.msk.f32.vlgmr.msra.gmra.mxu3 %vm312_vm1, %v483_v3  ;;  %v2223_v3 = vld [vmem:[#allocation10] ss:$0 sm:$0xff] }
 0x2d3   :  { %v628_v36 = vsub.f32 1.0, %v627_v35  ;;  %686 = vmatpush.msrb.mxu3 %v666_v47 }
 0x2d5   :  { %v629_v37 = vmul.f32 %v2263_v34, %v628_v36  ;;  %687 = vmatpush.msrb.mxu3 %v665_v48 }
 0x2d7   :  { %v630_v38 = vadd.f32 %v2263_v34, %v629_v37  ;;  %688 = vmatpush.msrb.mxu3 %v664_v49 }
 0x2d9   :  { %v418_v5 = vpop.permute.xlu1 %417  ;;  %v2981_v39 = vsel %vm631_vm5, %v2263_v34, %v630_v38  ;;  %689 = vmatpush.msrb.mxu3 %v663_v50 }
 0x2da   :  { %438 = vmatpush.msrb.mxu2 %v418_v5 }
 0x2db   :  { %2109 = vmatmul.msk.f32.vlgmr.msrb.gmra.mxu2 %vm312_vm1, %v416_v7  ;;  %v2224_v7 = vld [vmem:[#allocation5] ss:$0 sm:$0xff] }
 0x2dc   :  { %572 = vmatpush.msra.mxu2 %v552_v8 }
 0x2e3   :  { %2115 = vmatmul.msk.f32.vlgmr.msra.gmra.mxu2 %vm312_vm1, %v550_v10  ;;  %v2225_v10 = vld [vmem:[%s3307_s8] ss:$0 sm:$0xff] }
 0x33f   :  { %v722_v8 = vpop.f32.mrf.mxu0 }
 0x340   :  { %v3011_v9 = vadd.f32 %v2224_v7, %v722_v8 }
 0x342   :  { %2119 = vmatpush.xpose.msk.msrb.mxu2 %vm312_vm1, %v3011_v9 }
 0x345   :  { %v373_v12 = vpop.f32.mrf.mxu2 }
 0x355   :  { %v507_v11 = vpop.f32.mrf.mxu3 }
 0x356   :  { %582 = vrot.lane.b32.xlu1 %v507_v11, %s2665_s6 }
 0x35e   :  { %v440_v13 = vpop.f32.mrf.mxu2 }
 0x35f   :  { %578 = vrot.lane.b32.xlu0 %v440_v13, %s2672_s3 }
 0x366   :  { %v574_v14 = vpop.f32.mrf.mxu2 }
 0x367   :  { %586 = vrot.lane.b32.xlu0 %v574_v14, %s2692_s17 }
 0x36f   :  { %796 = vrot.lane.b32.xlu0 %v3011_v9, %s2681_s25 }
 0x377   :  { %862 = vrot.lane.b32.xlu0 %v3011_v9, %s2683_s24 }
 0x37f   :  { %928 = vrot.lane.b32.xlu0 %v3011_v9, %s2686_s20 }
 0x3c8   :  { %v583_v21 = vpop.permute.xlu1 %582 }
 0x3d1   :  { %v579_v19 = vpop.permute.xlu0 %578 }
 0x3d2   :  { %v589_v20 = vsel %vm312_vm1, %v373_v12, %v579_v19 }
 0x3d3   :  { %v591_v23 = vsel %vm590_vm3, %v589_v20, %v583_v21 }
 0x3d9   :  { %v587_v24 = vpop.permute.xlu0 %586 }
 0x3da   :  { %v593_v25 = vsel %vm592_vm4, %v591_v23, %v587_v24 }
 0x3db   :  { %2116 = vmatmul.msk.f32.vlgmr.msra.gmra.mxu1 %vm280_vm0, %v593_v25 }
 0x3e1   :  { %v797_v13 = vpop.permute.xlu0 %796 }
 0x3e2   :  { %2122 = vmatpush.xpose.msk.msra.mxu3 %vm312_vm1, %v797_v13  ;;  %v726_v13 = vld [vmem:[#allocation7 + $0x8] sm:$0xff] }
 0x3e9   :  { %v863_v14 = vpop.permute.xlu0 %862 }
 0x3ea   :  { %2125 = vmatpush.xpose.msk.msra.mxu2 %vm312_vm1, %v863_v14  ;;  %v725_v14 = vld [vmem:[#allocation7] sm:$0xff] }
 0x3f1   :  { %v929_v15 = vpop.permute.xlu0 %928 }
 0x458   :  { %v617_v27 = vpop.f32.mrf.mxu1 }
 0x459   :  { %v618_v28 = vadd.f32 %v2221_v26, %v617_v27 }
 0x45b   :  { %v622_v29 = vadd.f32 %v618_v28, %v2899_v6 }
 0x45d   :  { %v623_v30 = vsel %vm280_vm0, %v622_v29, 0.0 }
 0x45e   :  { %624 = vadd.xlane.f32.xlu2 %v623_v30 }
 0x4d1   :  { %v625_v40 = vpop.xlane.xlu2 %624 }
 0x4d2   :  { %v633_v6 = vmul.f32 %v2981_v39, %v625_v40 }
 0x4d4   :  { %v634_v41 = vsub.f32 %v622_v29, %v633_v6 }
 0x4d6   :  { %v635_v42 = vmul.f32 %v634_v41, %v634_v41 }
 0x4d8   :  { %v636_v43 = vsel %vm280_vm0, %v635_v42, 0.0 }
 0x4d9   :  { %637 = vadd.xlane.f32.xlu1 %v636_v43 }
 0x54c   :  { %v638_v51 = vpop.xlane.xlu1 %637 }
 0x54d   :  { %v639_v52 = vmul.f32 0.032258064, %v638_v51 }
 0x54f   :  { %2264 = vrsqrt.f32 %v639_v52  ;;  %vm647_vm6 = vcmp.eq.f32.partialorder %v639_v52, inf  ;;  %v650_v60 = vand.u32 2147483648, %v639_v52  ;;  %vm649_vm7 = vcmp.eq.f32.partialorder %v639_v52, 0.0 }
 0x555   :  { %v2265_v53 = vpop.eup %2264 }
 0x556   :  { %v641_v54 = vmul.f32 %v2265_v53, %v639_v52 }
 0x558   :  { %v642_v55 = vmul.f32 %v2265_v53, %v641_v54 }
 0x55a   :  { %v643_v56 = vmul.f32 0.5, %v642_v55 }
 0x55c   :  { %v644_v57 = vsub.f32 1.5, %v643_v56 }
 0x55e   :  { %v645_v58 = vmul.f32 %v2265_v53, %v644_v57 }
 0x560   :  { %v646_v59 = vmul.f32 %v645_v58, %v639_v52 }
 0x562   :  { %v648_v61 = vsel %vm647_vm6, %v639_v52, %v646_v59 }
 0x563   :  { %v651_v62 = vsel %vm649_vm7, %v650_v60, %v648_v61 }
 0x564   :  { %v652_v63 = vadd.f32 1e-06, %v651_v62 }
 0x566   :  { %2266 = vrcp.f32 %v652_v63 }
 0x56c   :  { %v2267_v1 = vpop.eup %2266 }
 0x56d   :  { %v654_v2 = vmul.f32 %v2267_v1, %v634_v41 }
 0x56f   :  { %v658_v4 = vmul.f32 %v2222_v0, %v654_v2 }
 0x571   :  { %v3007_v5 = vadd.f32 %v2223_v3, %v658_v4 }
 0x573   :  { %2117 = vmatmul.msk.f32.vlgmr.msrb.gmra.mxu3 %vm280_vm0, %v3007_v5 }
 0x574   :  { %2128 = vmatpush.xpose.msk.msrb.mxu3 %vm312_vm1, %v929_v15 }
 0x5f6   :  { %v691_v11 = vpop.f32.mrf.mxu3 }
 0x5f7   :  { %v692_v12 = vadd.f32 %v2225_v10, %v691_v11  ;;  %v728_v11 = vld [vmem:[#allocation7 + $0x18] sm:$0xff] }
 0x5f9   :  { %926 = vrot.lane.b32.xlu2 %v692_v12, %s2686_s20  ;;  %794 = vrot.lane.b32.xlu0 %v692_v12, %s2681_s25 }
 0x5fa   :  { %2120 = vmatmul.msk.f32.vlgmr.msrb.gmra.mxu2 %vm312_vm1, %v692_v12 }
 0x5fb   :  { %1025 = vmatpush.msrb.mxu2 %v728_v11 }
 0x601   :  { %860 = vrot.lane.b32.xlu0 %v692_v12, %s2683_s24  ;;  %v727_v12 = vld [vmem:[#allocation7 + $0x10] sm:$0xff] }
 0x602   :  { %1026 = vmatpush.msrb.mxu2 %v727_v12 }
 0x604   :  { %1027 = vmatpush.msrb.mxu2 %v726_v13 }
 0x606   :  { %1028 = vmatpush.msrb.mxu2 %v725_v14 }
 0x653   :  { %v927_v17 = vpop.permute.xlu2 %926 }
 0x66b   :  { %v795_v16 = vpop.permute.xlu0 %794 }
 0x66c   :  { %2123 = vmatmul.msk.f32.vlgmr.msra.gmra.mxu3 %vm312_vm1, %v795_v16 }
 0x673   :  { %v861_v18 = vpop.permute.xlu0 %860 }
 0x674   :  { %2126 = vmatmul.msk.f32.vlgmr.msra.gmra.mxu2 %vm312_vm1, %v861_v18  ;;  %2129 = vmatmul.msk.f32.vlgmr.msrb.gmra.mxu3 %vm312_vm1, %v927_v17 }
 0x67d   :  { %v753_v19 = vpop.f32.mrf.mxu2 }
 0x67e   :  { %v756_v20 = vmul.f32 0.35355338, %v753_v19 }
 0x680   :  { %v757_v21 = vsel %vm312_vm1, %v756_v20, -inf }
 0x681   :  { %758 = vmax.xlane.f32.xlu1 %v757_v21  ;;  %v2226_v21 = vld [vmem:[#allocation8] ss:$0 sm:$0xff] }
 0x6ef   :  { %v819_v23 = vpop.f32.mrf.mxu3 }
 0x6f0   :  { %v822_v24 = vmul.f32 0.35355338, %v819_v23 }
 0x6f2   :  { %v823_v25 = vsel %vm312_vm1, %v822_v24, -inf }
 0x6f3   :  { %824 = vmax.xlane.f32.xlu0 %v823_v25 }
 0x6f4   :  { %v759_v26 = vpop.xlane.xlu1 %758 }
 0x6f5   :  { %v760_v27 = vsub.f32 %v756_v20, %v759_v26 }
 0x6f7   :  { %v761_v28 = vmul.f32 1.442695, %v760_v27  ;;  %v885_v29 = vpop.f32.mrf.mxu2  ;;  %v951_v32 = vpop.f32.mrf.mxu3 }
 0x6f8   :  { %v888_v30 = vmul.f32 0.35355338, %v885_v29  ;;  %v954_v33 = vmul.f32 0.35355338, %v951_v32  ;;  %v1072_v32 = vld [vmem:[#allocation17 + $0x18] sm:$0xff] }
 0x6f9   :  { %2268 = vpow2.f32 %v761_v28 }
 0x6fa   :  { %v889_v31 = vsel %vm312_vm1, %v888_v30, -inf  ;;  %v955_v36 = vsel %vm312_vm1, %v954_v33, -inf }
 0x6fb   :  { %890 = vmax.xlane.f32.xlu1 %v889_v31 }
 0x6ff   :  { %v2269_v34 = vpop.eup %2268 }
 0x700   :  { %v763_v35 = vsel %vm312_vm1, %v2269_v34, 0.0 }
 0x701   :  { %764 = vadd.xlane.f32.xlu2 %v763_v35  ;;  %v1069_v35 = vld [vmem:[#allocation17] sm:$0xff] }
 0x703   :  { %956 = vmax.xlane.f32.xlu1 %v955_v36 }
 0x719   :  { %900 = vrot.lane.b32.xlu2 %v3011_v9, %s2684_s15 }
 0x71c   :  { %768 = vrot.lane.b32.xlu1 %v3011_v9, %s2682_s19 }
 0x766   :  { %v825_v37 = vpop.xlane.xlu0 %824 }
 0x767   :  { %v826_v38 = vsub.f32 %v822_v24, %v825_v37  ;;  %v1108_v37 = vld [vmem:[%s3320_s21 + $0x38] sm:$0xff] }
 0x768   :  { %1125 = vmatpush.msra.mxu3 %v1108_v37 }
 0x769   :  { %v827_v40 = vmul.f32 1.442695, %v826_v38  ;;  %v1107_v38 = vld [vmem:[%s3320_s21 + $0x30] sm:$0xff] }
 0x76a   :  { %1126 = vmatpush.msra.mxu3 %v1107_v38  ;;  %v2233_v38 = vld [vmem:[%s3340_s30 + $0x1] ss:$0 sm:$0xff]  ;;  %s3345_s30 = smov 48  }
 0x76b   :  { %2270 = vpow2.f32 %v827_v40 }
 0x76e   :  { %v891_v6 = vpop.xlane.xlu1 %890 }
 0x76f   :  { %v892_v41 = vsub.f32 %v888_v30, %v891_v6  ;;  %v1106_v6 = vld [vmem:[%s3320_s21 + $0x28] sm:$0xff] }
 0x770   :  { %1127 = vmatpush.msra.mxu3 %v1106_v6 }
 0x771   :  { %v2271_v42 = vpop.eup %2270  ;;  %v893_v43 = vmul.f32 1.442695, %v892_v41 }
 0x772   :  { %v829_v44 = vsel %vm312_vm1, %v2271_v42, 0.0 }
 0x773   :  { %2272 = vpow2.f32 %v893_v43  ;;  %830 = vadd.xlane.f32.xlu1 %v829_v44  ;;  %v1104_v44 = vld [vmem:[%s3320_s21 + $0x18] sm:$0xff] }
 0x774   :  { %v765_v52 = vpop.xlane.xlu2 %764 }
 0x776   :  { %v957_v45 = vpop.xlane.xlu1 %956 }
 0x777   :  { %v958_v47 = vsub.f32 %v954_v33, %v957_v45  ;;  %v1071_v33 = vld [vmem:[#allocation17 + $0x10] sm:$0xff] }
 0x779   :  { %v2273_v48 = vpop.eup %2272  ;;  %v959_v49 = vmul.f32 1.442695, %v958_v47 }
 0x77a   :  { %v895_v50 = vsel %vm312_vm1, %v2273_v48, 0.0 }
 0x77b   :  { %2274 = vpow2.f32 %v959_v49  ;;  %896 = vadd.xlane.f32.xlu1 %v895_v50 }
 0x77c   :  { %2276 = vrcp.f32 %v765_v52  ;;  %v901_v57 = vpop.permute.xlu2 %900 }
 0x781   :  { %v2275_v51 = vpop.eup %2274 }
 0x782   :  { %v961_v53 = vsel %vm312_vm1, %v2275_v51, 0.0  ;;  %v2277_v54 = vpop.eup %2276 }
 0x783   :  { %962 = vadd.xlane.f32.xlu0 %v961_v53  ;;  %v767_v55 = vmul.f32 %v2277_v54, %v2269_v34  ;;  %v1070_v34 = vld [vmem:[#allocation17 + $0x8] sm:$0xff]  ;;  %v2227_v54 = vld [vmem:[#allocation11] ss:$0 sm:$0xff] }
 0x78e   :  { %v769_v56 = vpop.permute.xlu1 %768 }
 0x78f   :  { %789 = vmatpush.msrb.mxu1 %v769_v56 }
 0x790   :  { %2121 = vmatmul.msk.f32.vlgmr.msrb.gmra.mxu1 %vm312_vm1, %v767_v55 }
 0x791   :  { %921 = vmatpush.msra.mxu1 %v901_v57  ;;  %v2228_v57 = vld [vmem:[#allocation13] ss:$0 sm:$0xff] }
 0x793   :  { %1092 = vmatpush.msrb.mxu1 %v1072_v32 }
 0x794   :  { %966 = vrot.lane.b32.xlu1 %v3011_v9, %s2680_s18 }
 0x795   :  { %1093 = vmatpush.msrb.mxu1 %v1071_v33  ;;  %v2231_v33 = vld [vmem:[#allocation14] ss:$0 sm:$0xff] }
 0x797   :  { %834 = vrot.lane.b32.xlu0 %v3011_v9, %s2685_s9  ;;  %1094 = vmatpush.msrb.mxu1 %v1070_v34 }
 0x799   :  { %1095 = vmatpush.msrb.mxu1 %v1069_v35 }
 0x7e6   :  { %v831_v58 = vpop.xlane.xlu1 %830 }
 0x7ee   :  { %v897_v59 = vpop.xlane.xlu1 %896 }
 0x7ef   :  { %2278 = vrcp.f32 %v897_v59 }
 0x7f0   :  { %2280 = vrcp.f32 %v831_v58 }
 0x7f5   :  { %v2279_v60 = vpop.eup %2278 }
 0x7f6   :  { %v899_v61 = vmul.f32 %v2279_v60, %v2273_v48  ;;  %v963_v62 = vpop.xlane.xlu0 %962  ;;  %v2281_v63 = vpop.eup %2280  ;;  %v1103_v60 = vld [vmem:[%s3320_s21 + $0x10] sm:$0xff] }
 0x7f7   :  { %2282 = vrcp.f32 %v963_v62  ;;  %v833_v0 = vmul.f32 %v2281_v63, %v2271_v42  ;;  %v1105_v42 = vld [vmem:[%s3320_s21 + $0x20] sm:$0xff]  ;;  %v2229_v63 = vld [vmem:[#allocation19] ss:$0 sm:$0xff] }
 0x7f8   :  { %2127 = vmatmul.msk.f32.vlgmr.msra.gmra.mxu1 %vm312_vm1, %v899_v61  ;;  %1128 = vmatpush.msra.mxu3 %v1105_v42  ;;  %v1102_v61 = vld [vmem:[%s3320_s21 + $0x8] sm:$0xff]  ;;  %v1101_v62 = vld [vmem:[%s3320_s21] sm:$0xff] }
 0x7fa   :  { %1129 = vmatpush.msra.mxu3 %v1104_v44 }
 0x7fc   :  { %1130 = vmatpush.msra.mxu3 %v1103_v60 }
 0x7fd   :  { %v2283_v3 = vpop.eup %2282 }
 0x7fe   :  { %v965_v4 = vmul.f32 %v2283_v3, %v2275_v51  ;;  %1131 = vmatpush.msra.mxu3 %v1102_v61  ;;  %v2230_v3 = vld [vmem:[#allocation20] ss:$0 sm:$0xff] }
 0x800   :  { %1132 = vmatpush.msra.mxu3 %v1101_v62 }
 0x806   :  { %v967_v2 = vpop.permute.xlu1 %966 }
 0x809   :  { %v835_v1 = vpop.permute.xlu0 %834 }
 0x80a   :  { %855 = vmatpush.msra.mxu0 %v835_v1 }
 0x80b   :  { %2124 = vmatmul.msk.f32.vlgmr.msra.gmra.mxu0 %vm312_vm1, %v833_v0 }
 0x80c   :  { %987 = vmatpush.msrb.mxu0 %v967_v2 }
 0x80d   :  { %v791_v7 = vpop.f32.mrf.mxu1 }
 0x813   :  { %2130 = vmatmul.msk.f32.vlgmr.msrb.gmra.mxu0 %vm312_vm1, %v965_v4 }
 0x875   :  { %v923_v8 = vpop.f32.mrf.mxu1 }
 0x876   :  { %997 = vrot.lane.b32.xlu1 %v923_v8, %s2665_s6 }
 0x888   :  { %v857_v9 = vpop.f32.mrf.mxu0 }
 0x889   :  { %993 = vrot.lane.b32.xlu0 %v857_v9, %s2672_s3 }
 0x890   :  { %v989_v10 = vpop.f32.mrf.mxu0 }
 0x891   :  { %1001 = vrot.lane.b32.xlu0 %v989_v10, %s2692_s17 }
 0x8e8   :  { %v998_v17 = vpop.permute.xlu1 %997 }
 0x8fb   :  { %v994_v15 = vpop.permute.xlu0 %993 }
 0x8fc   :  { %v1004_v16 = vsel %vm312_vm1, %v791_v7, %v994_v15  ;;  %v2137_v15 = vld [vmem:[%s3337_s1 + $0x38] sm:$0xff] }
 0x8fd   :  { %v1005_v18 = vsel %vm590_vm3, %v1004_v16, %v998_v17  ;;  %v2136_v16 = vld [vmem:[%s3337_s1 + $0x30] sm:$0xff]  ;;  %1198 = vmatpush.msra.mxu0 %v2137_v15  ;;  %v2135_v17 = vld [vmem:[%s3337_s1 + $0x28] sm:$0xff] }
 0x8ff   :  { %1199 = vmatpush.msra.mxu0 %v2136_v16 }
 0x901   :  { %1200 = vmatpush.msra.mxu0 %v2135_v17 }
 0x903   :  { %v1002_v19 = vpop.permute.xlu0 %1001 }
 0x904   :  { %v1006_v20 = vsel %vm592_vm4, %v1005_v18, %v1002_v19  ;;  %v2134_v18 = vld [vmem:[%s3337_s1 + $0x20] sm:$0xff] }
 0x905   :  { %2131 = vmatmul.msk.f32.vlgmr.msrb.gmra.mxu2 %vm280_vm0, %v1006_v20  ;;  %1201 = vmatpush.msra.mxu0 %v2134_v18 }
 0x988   :  { %v1030_v23 = vpop.f32.mrf.mxu2 }
 0x989   :  { %v1031_v24 = vadd.f32 %v2226_v21, %v1030_v23 }
 0x98b   :  { %v1035_v25 = vadd.f32 %v1031_v24, %v3007_v5 }
 0x98d   :  { %v1036_v26 = vsel %vm280_vm0, %v1035_v25, 0.0 }
 0x98e   :  { %1037 = vadd.xlane.f32.xlu1 %v1036_v26 }
 0xa01   :  { %v1038_v27 = vpop.xlane.xlu1 %1037 }
 0xa02   :  { %v1039_v28 = vmul.f32 %v1038_v27, %v2981_v39 }
 0xa04   :  { %v1040_v29 = vsub.f32 %v1035_v25, %v1039_v28 }
 0xa06   :  { %v1041_v30 = vmul.f32 %v1040_v29, %v1040_v29 }
 0xa08   :  { %v1042_v31 = vsel %vm280_vm0, %v1041_v30, 0.0 }
 0xa09   :  { %1043 = vadd.xlane.f32.xlu2 %v1042_v31 }
 0xa7c   :  { %v1044_v5 = vpop.xlane.xlu2 %1043 }
 0xa7d   :  { %v1045_v36 = vmul.f32 0.032258064, %v1044_v5  ;;  %v2232_v5 = vld [vmem:[#allocation16] ss:$0 sm:$0xff] }
 0xa7f   :  { %2284 = vrsqrt.f32 %v1045_v36  ;;  %vm1053_vm8 = vcmp.eq.f32.partialorder %v1045_v36, inf  ;;  %v1056_v50 = vand.u32 2147483648, %v1045_v36  ;;  %vm1055_vm9 = vcmp.eq.f32.partialorder %v1045_v36, 0.0 }
 0xa85   :  { %v2285_v40 = vpop.eup %2284 }
 0xa86   :  { %v1047_v41 = vmul.f32 %v2285_v40, %v1045_v36 }
 0xa88   :  { %v1048_v43 = vmul.f32 %v2285_v40, %v1047_v41 }
 0xa8a   :  { %v1049_v45 = vmul.f32 0.5, %v1048_v43 }
 0xa8c   :  { %v1050_v47 = vsub.f32 1.5, %v1049_v45 }
 0xa8e   :  { %v1051_v48 = vmul.f32 %v2285_v40, %v1050_v47 }
 0xa90   :  { %v1052_v49 = vmul.f32 %v1051_v48, %v1045_v36 }
 0xa92   :  { %v1054_v51 = vsel %vm1053_vm8, %v1045_v36, %v1052_v49 }
 0xa93   :  { %v1057_v52 = vsel %vm1055_vm9, %v1056_v50, %v1054_v51 }
 0xa94   :  { %v1058_v53 = vadd.f32 1e-06, %v1057_v52 }
 0xa96   :  { %2286 = vrcp.f32 %v1058_v53 }
 0xa9c   :  { %v2287_v55 = vpop.eup %2286 }
 0xa9d   :  { %v1060_v56 = vmul.f32 %v2287_v55, %v1040_v29 }
 0xa9f   :  { %v1064_v58 = vmul.f32 %v2227_v54, %v1060_v56 }
 0xaa1   :  { %v1068_v59 = vadd.f32 %v2228_v57, %v1064_v58 }
 0xaa3   :  { %2132 = vmatmul.msk.f32.vlgmr.msrb.gmra.mxu1 %vm280_vm0, %v1068_v59 }
 0xb20   :  { %v1097_v0 = vpop.f32.mrf.mxu1 }
 0xb21   :  { %v1098_v1 = vadd.f32 %v2229_v63, %v1097_v0 }
 0xb23   :  { %v1100_v2 = vmax.f32 %v1098_v1, 0.0 }
 0xb25   :  { %2133 = vmatmul.msk.f32.vlgmr.msra.gmra.mxu3 %vm1113_vm10, %v1100_v2 }
 0xba8   :  { %v1134_v4 = vpop.f32.mrf.mxu3 }
 0xba9   :  { %v1135_v7 = vadd.f32 %v2230_v3, %v1134_v4 }
 0xbab   :  { %v1139_v8 = vadd.f32 %v1135_v7, %v1068_v59 }
 0xbad   :  { %v1140_v9 = vsel %vm280_vm0, %v1139_v8, 0.0 }
 0xbae   :  { %1141 = vadd.xlane.f32.xlu0 %v1140_v9 }
 0xc21   :  { %v1142_v10 = vpop.xlane.xlu0 %1141 }
 0xc22   :  { %v1143_v11 = vmul.f32 %v1142_v10, %v2981_v39 }
 0xc24   :  { %v1144_v12 = vsub.f32 %v1139_v8, %v1143_v11 }
 0xc26   :  { %v1145_v13 = vmul.f32 %v1144_v12, %v1144_v12 }
 0xc28   :  { %v1146_v14 = vsel %vm280_vm0, %v1145_v13, 0.0 }
 0xc29   :  { %1147 = vadd.xlane.f32.xlu1 %v1146_v14 }
 0xc9c   :  { %v1148_v19 = vpop.xlane.xlu1 %1147 }
 0xc9d   :  { %v1149_v20 = vmul.f32 0.032258064, %v1148_v19 }
 0xc9f   :  { %2288 = vrsqrt.f32 %v1149_v20  ;;  %vm1157_vm11 = vcmp.eq.f32.partialorder %v1149_v20, inf  ;;  %v1160_v29 = vand.u32 2147483648, %v1149_v20  ;;  %vm1159_vm12 = vcmp.eq.f32.partialorder %v1149_v20, 0.0 }
 0xca5   :  { %v2289_v21 = vpop.eup %2288 }
 0xca6   :  { %v1151_v23 = vmul.f32 %v2289_v21, %v1149_v20 }
 0xca8   :  { %v1152_v24 = vmul.f32 %v2289_v21, %v1151_v23 }
 0xcaa   :  { %v1153_v25 = vmul.f32 0.5, %v1152_v24 }
 0xcac   :  { %v1154_v26 = vsub.f32 1.5, %v1153_v25 }
 0xcae   :  { %v1155_v27 = vmul.f32 %v2289_v21, %v1154_v26 }
 0xcb0   :  { %v1156_v28 = vmul.f32 %v1155_v27, %v1149_v20 }
 0xcb2   :  { %v1158_v30 = vsel %vm1157_vm11, %v1149_v20, %v1156_v28 }
 0xcb3   :  { %v1161_v31 = vsel %vm1159_vm12, %v1160_v29, %v1158_v30 }
 0xcb4   :  { %v1162_v32 = vadd.f32 1e-06, %v1161_v31 }
 0xcb6   :  { %2290 = vrcp.f32 %v1162_v32 }
 0xcbc   :  { %v2291_v34 = vpop.eup %2290 }
 0xcbd   :  { %v1164_v35 = vmul.f32 %v2291_v34, %v1144_v12 }
 0xcbf   :  { %v1168_v36 = vmul.f32 %v2231_v33, %v1164_v35 }
 0xcc1   :  { %v3106_v37 = vadd.f32 %v2232_v5, %v1168_v36 }
 0xcc3   :  { %2139 = vmatmul.msk.f32.vlgmr.msra.gmra.mxu0 %vm280_vm0, %v3106_v37 }
 0xd40   :  { %v1203_v40 = vpop.f32.mrf.mxu0 }
 0xd41   :  { %v3113_v6 = vadd.f32 %v2233_v38, %v1203_v40 }
 0xd43   :  { %1253 = vrot.lane.b32.xlu1 %v3113_v6, %s2688_s22  ;;  %1214 = vrot.lane.b32.xlu2 %v3113_v6, %s2682_s19 }
 0xd4b   :  { %1279 = vrot.lane.b32.xlu2 %v3113_v6, %s2681_s25 }
 0xd53   :  { %1415 = vrot.lane.b32.xlu2 %v3113_v6, %s2680_s18 }
 0xd9d   :  { %v1215_v41 = vpop.permute.xlu2 %1214 }
 0xd9e   :  { %2145 = vmatpush.xpose.msk.msra.mxu2 %vm312_vm1, %v1215_v41 }
 0xda1   :  { %2146 = vmatmul.msk.f32.vlgmr.msra.gmra.mxu2 %vm312_vm1, %v3113_v6 }
 0xda5   :  { %v1280_v51 = vpop.permute.xlu2 %1279 }
 0xdad   :  { %v1416_v55 = vpop.permute.xlu2 %1415 }
 0xdb5   :  { %v1254_v42 = vpop.permute.xlu1 %1253 }
 0xdb6   :  { %1274 = vmatpush.msra.mxu1 %v1254_v42 }
 0xe24   :  { %v1237_v43 = vpop.f32.mrf.mxu2 }
 0xe25   :  { %v1240_v44 = vmul.f32 0.35355338, %v1237_v43  ;;  %v2143_v43 = vld [vmem:[%s3341_s7 + $0x38] sm:$0xff] }
 0xe27   :  { %v1241_v45 = vadd.f32 %v1240_v44, %v2931_v22  ;;  %v2141_v44 = vld [vmem:[%s3341_s7 + $0x28] sm:$0xff] }
 0xe29   :  { %v1242_v47 = vsel %vm312_vm1, %v1241_v45, -inf }
 0xe2a   :  { %1243 = vmax.xlane.f32.xlu0 %v1242_v47  ;;  %v2140_v47 = vld [vmem:[%s3341_s7 + $0x20] sm:$0xff] }
 0xe3e   :  { %1281 = vrot.lane.b32.xlu0 %v3113_v6, %s2685_s9 }
 0xe46   :  { %1348 = vrot.lane.b32.xlu0 %v3113_v6, %s2684_s15 }
 0xe4e   :  { %1413 = vrot.lane.b32.xlu0 %v3113_v6, %s2686_s20 }
 0xe9d   :  { %v1244_v48 = vpop.xlane.xlu0 %1243 }
 0xe9e   :  { %v1245_v49 = vsub.f32 %v1241_v45, %v1244_v48 }
 0xea0   :  { %v1246_v50 = vmul.f32 1.442695, %v1245_v49 }
 0xea2   :  { %2292 = vpow2.f32 %v1246_v50 }
 0xea8   :  { %v2293_v52 = vpop.eup %2292 }
 0xea9   :  { %v1248_v53 = vsel %vm312_vm1, %v2293_v52, 0.0 }
 0xeaa   :  { %1249 = vadd.xlane.f32.xlu1 %v1248_v53 }
 0xeb0   :  { %v1282_v54 = vpop.permute.xlu0 %1281 }
 0xeb1   :  { %2148 = vmatpush.xpose.msk.msrb.mxu0 %vm312_vm1, %v1282_v54  ;;  %v2234_v54 = vld [vmem:[%s3342_s2 + $0x1] ss:$0 sm:$0xff] }
 0xeb4   :  { %2149 = vmatmul.msk.f32.vlgmr.msrb.gmra.mxu0 %vm312_vm1, %v1280_v51 }
 0xeb5   :  { %2154 = vmatpush.xpose.msk.msra.mxu0 %vm312_vm1, %v1416_v55 }
 0xeb8   :  { %v1349_v56 = vpop.permute.xlu0 %1348 }
 0xeb9   :  { %2151 = vmatpush.xpose.msk.msrb.mxu1 %vm312_vm1, %v1349_v56 }
 0xec0   :  { %v1414_v57 = vpop.permute.xlu0 %1413 }
 0xec1   :  { %2155 = vmatmul.msk.f32.vlgmr.msra.gmra.mxu0 %vm312_vm1, %v1414_v57 }
 0xec3   :  { %1346 = vrot.lane.b32.xlu1 %v3113_v6, %s2683_s24 }
 0xf1d   :  { %v1250_v58 = vpop.xlane.xlu1 %1249 }
 0xf1e   :  { %2294 = vrcp.f32 %v1250_v58 }
 0xf24   :  { %v2295_v59 = vpop.eup %2294 }
 0xf25   :  { %v1252_v60 = vmul.f32 %v2295_v59, %v2293_v52  ;;  %v1596_v59 = vld [vmem:[#allocation2 + $0x38] sm:$0xff] }
 0xf26   :  { %1614 = vmatpush.msrb.mxu0 %v1596_v59 }
 0xf27   :  { %2147 = vmatmul.msk.f32.vlgmr.msra.gmra.mxu1 %vm312_vm1, %v1252_v60  ;;  %v1595_v60 = vld [vmem:[#allocation2 + $0x30] sm:$0xff] }
 0xf28   :  { %1513 = vmatpush.msra.mxu1 %v2143_v43  ;;  %1615 = vmatpush.msrb.mxu0 %v1595_v60 }
 0xf31   :  { %v1304_v61 = vpop.f32.mrf.mxu0 }
 0xf32   :  { %v1307_v62 = vmul.f32 0.35355338, %v1304_v61 }
 0xf34   :  { %v1308_v63 = vadd.f32 %v1307_v62, %v2931_v22 }
 0xf35   :  { %v1347_v0 = vpop.permute.xlu1 %1346 }
 0xf36   :  { %2152 = vmatmul.msk.f32.vlgmr.msrb.gmra.mxu1 %vm312_vm1, %v1347_v0  ;;  %v1309_v1 = vsel %vm312_vm1, %v1308_v63, -inf }
 0xf37   :  { %1310 = vmax.xlane.f32.xlu2 %v1309_v1 }
 0xf3e   :  { %v1438_v2 = vpop.f32.mrf.mxu0 }
 0xf3f   :  { %v1441_v3 = vmul.f32 0.35355338, %v1438_v2  ;;  %v1594_v2 = vld [vmem:[#allocation2 + $0x28] sm:$0xff] }
 0xf40   :  { %1616 = vmatpush.msrb.mxu0 %v1594_v2 }
 0xf41   :  { %v1442_v4 = vadd.f32 %v1441_v3, %v2931_v22  ;;  %v1593_v3 = vld [vmem:[#allocation2 + $0x20] sm:$0xff] }
 0xf42   :  { %1617 = vmatpush.msrb.mxu0 %v1593_v3 }
 0xf43   :  { %v1443_v7 = vsel %vm312_vm1, %v1442_v4, -inf  ;;  %2165 = vmatmul.msk.f32.vlgmr.msrb.gmra.mxu0 %vm280_vm0, %v2988_v46 }
 0xf44   :  { %1444 = vmax.xlane.f32.xlu0 %v1443_v7  ;;  %v2160_v7 = vld [vmem:[%s3344_s10 + $0x28] sm:$0xff] }
 0xfa4   :  { %v3148_v9 = vpop.f32.mrf.mxu1 }
 0xfaa   :  { %v1311_v8 = vpop.xlane.xlu2 %1310 }
 0xfab   :  { %v1312_v10 = vsub.f32 %v1308_v63, %v1311_v8  ;;  %v2159_v8 = vld [vmem:[%s3344_s10 + $0x20] sm:$0xff] }
 0xfad   :  { %v1313_v11 = vmul.f32 1.442695, %v1312_v10 }
 0xfaf   :  { %2296 = vpow2.f32 %v1313_v11 }
 0xfb3   :  { %v1371_v12 = vpop.f32.mrf.mxu1 }
 0xfb4   :  { %v1374_v13 = vmul.f32 0.35355338, %v1371_v12 }
 0xfb5   :  { %v2297_v14 = vpop.eup %2296 }
 0xfb6   :  { %v1315_v15 = vsel %vm312_vm1, %v2297_v14, 0.0  ;;  %v1375_v16 = vadd.f32 %v1374_v13, %v2931_v22 }
 0xfb7   :  { %v1445_v17 = vpop.xlane.xlu0 %1444  ;;  %1316 = vadd.xlane.f32.xlu2 %v1315_v15 }
 0xfb8   :  { %v1446_v18 = vsub.f32 %v1442_v4, %v1445_v17  ;;  %v1376_v19 = vsel %vm312_vm1, %v1375_v16, -inf  ;;  %v2161_v4 = vld [vmem:[%s3344_s10 + $0x30] sm:$0xff] }
 0xfb9   :  { %1377 = vmax.xlane.f32.xlu1 %v1376_v19 }
 0xfba   :  { %v1447_v20 = vmul.f32 1.442695, %v1446_v18 }
 0xfbc   :  { %2298 = vpow2.f32 %v1447_v20 }
 0xfc2   :  { %v2299_v21 = vpop.eup %2298 }
 0xfc3   :  { %v1449_v23 = vsel %vm312_vm1, %v2299_v21, 0.0 }
 0xfc4   :  { %1450 = vadd.xlane.f32.xlu0 %v1449_v23 }
 0xfcf   :  { %1320 = vrot.lane.b32.xlu2 %v3113_v6, %s2690_s26 }
 0xfd8   :  { %1454 = vrot.lane.b32.xlu0 %v3113_v6, %s2689_s5 }
0x102a   :  { %v1317_v24 = vpop.xlane.xlu2 %1316 }
0x102b   :  { %2300 = vrcp.f32 %v1317_v24 }
0x102c   :  { %v1378_v22 = vpop.xlane.xlu1 %1377 }
0x102d   :  { %v1379_v25 = vsub.f32 %v1375_v16, %v1378_v22  ;;  %v2236_v22 = vld [vmem:[#allocation10 + $0x1] ss:$0 sm:$0xff] }
0x102f   :  { %v1380_v26 = vmul.f32 1.442695, %v1379_v25 }
0x1031   :  { %v2301_v27 = vpop.eup %2300  ;;  %2302 = vpow2.f32 %v1380_v26 }
0x1032   :  { %v1319_v28 = vmul.f32 %v2301_v27, %v2297_v14  ;;  %v1321_v29 = vpop.permute.xlu2 %1320  ;;  %v2237_v27 = vld [vmem:[#allocation5 + $0x1] ss:$0 sm:$0xff] }
0x1033   :  { %1341 = vmatpush.msrb.mxu2 %v1321_v29 }
0x1034   :  { %2150 = vmatmul.msk.f32.vlgmr.msrb.gmra.mxu2 %vm312_vm1, %v1319_v28  ;;  %v1619_v28 = vpop.f32.mrf.mxu0 }
0x1035   :  { %v3212_v29 = vadd.f32 %v2237_v27, %v1619_v28 }
0x1037   :  { %v2303_v30 = vpop.eup %2302  ;;  %v1451_v32 = vpop.xlane.xlu0 %1450 }
0x1038   :  { %v1382_v31 = vsel %vm312_vm1, %v2303_v30, 0.0  ;;  %2304 = vrcp.f32 %v1451_v32 }
0x1039   :  { %1383 = vadd.xlane.f32.xlu1 %v1382_v31 }
0x103e   :  { %v2305_v33 = vpop.eup %2304 }
0x103f   :  { %v1453_v34 = vmul.f32 %v2305_v33, %v2299_v21  ;;  %v2235_v21 = vld [vmem:[%s3312_s13 + $0x1] ss:$0 sm:$0xff] }
0x104a   :  { %v1455_v35 = vpop.permute.xlu0 %1454 }
0x104b   :  { %1475 = vmatpush.msra.mxu2 %v1455_v35 }
0x104c   :  { %2156 = vmatmul.msk.f32.vlgmr.msra.gmra.mxu2 %vm312_vm1, %v1453_v34 }
0x104d   :  { %2166 = vmatpush.xpose.msk.msrb.mxu2 %vm312_vm1, %v3212_v29 }
0x1052   :  { %1387 = vrot.lane.b32.xlu1 %v3113_v6, %s3345_s30  ;;  %v2142_v6 = vld [vmem:[%s3341_s7 + $0x30] sm:$0xff] }
0x1053   :  { %1514 = vmatpush.msra.mxu1 %v2142_v6 }
0x1055   :  { %1515 = vmatpush.msra.mxu1 %v2141_v44 }
0x1057   :  { %1516 = vmatpush.msra.mxu1 %v2140_v47 }
0x10ac   :  { %v1384_v36 = vpop.xlane.xlu1 %1383 }
0x10ad   :  { %2306 = vrcp.f32 %v1384_v36 }
0x10b3   :  { %v2307_v38 = vpop.eup %2306 }
0x10b4   :  { %v1386_v40 = vmul.f32 %v2307_v38, %v2303_v30  ;;  %v2238_v30 = vld [vmem:[%s3307_s8 + $0x1] ss:$0 sm:$0xff] }
0x10b7   :  { %v1343_v5 = vpop.f32.mrf.mxu2 }
0x10b8   :  { %1481 = vrot.lane.b32.xlu2 %v1343_v5, %s2672_s3 }
0x10c4   :  { %v1388_v41 = vpop.permute.xlu1 %1387 }
0x10c5   :  { %1408 = vmatpush.msrb.mxu3 %v1388_v41 }
0x10c6   :  { %2153 = vmatmul.msk.f32.vlgmr.msrb.gmra.mxu3 %vm312_vm1, %v1386_v40 }
0x10cf   :  { %v1477_v42 = vpop.f32.mrf.mxu2 }
0x10d0   :  { %1489 = vrot.lane.b32.xlu1 %v1477_v42, %s2692_s17 }
0x10d8   :  { %1695 = vrot.lane.b32.xlu1 %v3212_v29, %s2681_s25 }
0x10e0   :  { %1761 = vrot.lane.b32.xlu1 %v3212_v29, %s2683_s24 }
0x10e8   :  { %1827 = vrot.lane.b32.xlu1 %v3212_v29, %s2686_s20 }
0x1112   :  { %v1482_v48 = vpop.permute.xlu2 %1481 }
0x1113   :  { %v1492_v49 = vsel %vm312_vm1, %v3148_v9, %v1482_v48 }
0x1142   :  { %v1490_v51 = vpop.permute.xlu1 %1489 }
0x1149   :  { %v1410_v45 = vpop.f32.mrf.mxu3 }
0x114a   :  { %1485 = vrot.lane.b32.xlu0 %v1410_v45, %s2665_s6  ;;  %v1696_v33 = vpop.permute.xlu1 %1695 }
0x1152   :  { %v1762_v34 = vpop.permute.xlu1 %1761 }
0x1153   :  { %2172 = vmatpush.xpose.msk.msra.mxu2 %vm312_vm1, %v1762_v34 }
0x115a   :  { %v1828_v35 = vpop.permute.xlu1 %1827 }
0x11bc   :  { %v1486_v50 = vpop.permute.xlu0 %1485 }
0x11bd   :  { %v1493_v52 = vsel %vm590_vm3, %v1492_v49, %v1486_v50 }
0x11be   :  { %v1494_v53 = vsel %vm592_vm4, %v1493_v52, %v1490_v51 }
0x11bf   :  { %2157 = vmatmul.msk.f32.vlgmr.msra.gmra.mxu1 %vm280_vm0, %v1494_v53 }
0x123c   :  { %v1518_v55 = vpop.f32.mrf.mxu1 }
0x123d   :  { %v1519_v56 = vadd.f32 %v2234_v54, %v1518_v55 }
0x123f   :  { %v1525_v57 = vadd.f32 %v1519_v56, %v3106_v37  ;;  %v2162_v37 = vld [vmem:[%s3344_s10 + $0x38] sm:$0xff] }
0x1240   :  { %1584 = vmatpush.msra.mxu3 %v2162_v37 }
0x1241   :  { %v1526_v58 = vsel %vm280_vm0, %v1525_v57, 0.0 }
0x1242   :  { %1527 = vadd.xlane.f32.xlu2 %v1526_v58  ;;  %1585 = vmatpush.msra.mxu3 %v2161_v4 }
0x1244   :  { %1586 = vmatpush.msra.mxu3 %v2160_v7 }
0x1246   :  { %1587 = vmatpush.msra.mxu3 %v2159_v8 }
0x1248   :  { %2169 = vmatpush.xpose.msk.msrb.mxu3 %vm312_vm1, %v1696_v33 }
0x12b5   :  { %v1528_v61 = vpop.xlane.xlu2 %1527 }
0x12b6   :  { %v1529_v62 = vmul.f32 %v1528_v61, %v2981_v39 }
0x12b8   :  { %v1530_v63 = vsub.f32 %v1525_v57, %v1529_v62 }
0x12ba   :  { %v1531_v0 = vmul.f32 %v1530_v63, %v1530_v63 }
0x12bc   :  { %v1532_v1 = vsel %vm280_vm0, %v1531_v0, 0.0 }
0x12bd   :  { %1533 = vadd.xlane.f32.xlu0 %v1532_v1 }
0x1330   :  { %v1534_v46 = vpop.xlane.xlu0 %1533 }
0x1331   :  { %v1535_v9 = vmul.f32 0.032258064, %v1534_v46 }
0x1333   :  { %2308 = vrsqrt.f32 %v1535_v9  ;;  %vm1543_vm13 = vcmp.eq.f32.partialorder %v1535_v9, inf  ;;  %v1546_v17 = vand.u32 2147483648, %v1535_v9  ;;  %vm1545_vm14 = vcmp.eq.f32.partialorder %v1535_v9, 0.0 }
0x1339   :  { %v2309_v10 = vpop.eup %2308 }
0x133a   :  { %v1537_v11 = vmul.f32 %v2309_v10, %v1535_v9 }
0x133c   :  { %v1538_v12 = vmul.f32 %v2309_v10, %v1537_v11 }
0x133e   :  { %v1539_v13 = vmul.f32 0.5, %v1538_v12 }
0x1340   :  { %v1540_v14 = vsub.f32 1.5, %v1539_v13 }
0x1342   :  { %v1541_v15 = vmul.f32 %v2309_v10, %v1540_v14 }
0x1344   :  { %v1542_v16 = vmul.f32 %v1541_v15, %v1535_v9 }
0x1346   :  { %v1544_v18 = vsel %vm1543_vm13, %v1535_v9, %v1542_v16 }
0x1347   :  { %v1547_v19 = vsel %vm1545_vm14, %v1546_v17, %v1544_v18 }
0x1348   :  { %v1548_v20 = vadd.f32 1e-06, %v1547_v19 }
0x134a   :  { %2310 = vrcp.f32 %v1548_v20 }
0x1350   :  { %v2311_v23 = vpop.eup %2310 }
0x1351   :  { %v1550_v24 = vmul.f32 %v2311_v23, %v1530_v63 }
0x1353   :  { %v1554_v25 = vmul.f32 %v2235_v21, %v1550_v24 }
0x1355   :  { %v3208_v26 = vadd.f32 %v2236_v22, %v1554_v25 }
0x1357   :  { %2164 = vmatmul.msk.f32.vlgmr.msra.gmra.mxu3 %vm280_vm0, %v3208_v26 }
0x1358   :  { %2175 = vmatpush.xpose.msk.msra.mxu3 %vm312_vm1, %v1828_v35 }
0x13da   :  { %v1589_v31 = vpop.f32.mrf.mxu3 }
0x13db   :  { %v1590_v32 = vadd.f32 %v2238_v30, %v1589_v31  ;;  %v1625_v30 = vld [vmem:[#allocation7 + $0x30] sm:$0xff]  ;;  %v1624_v31 = vld [vmem:[#allocation7 + $0x28] sm:$0xff] }
0x13dd   :  { %1825 = vrot.lane.b32.xlu2 %v1590_v32, %s2686_s20  ;;  %1693 = vrot.lane.b32.xlu1 %v1590_v32, %s2681_s25 }
0x13de   :  { %2167 = vmatmul.msk.f32.vlgmr.msrb.gmra.mxu2 %vm312_vm1, %v1590_v32 }
0x13e5   :  { %1759 = vrot.lane.b32.xlu1 %v1590_v32, %s2683_s24  ;;  %v1623_v32 = vld [vmem:[#allocation7 + $0x20] sm:$0xff] }
0x1437   :  { %v1826_v36 = vpop.permute.xlu2 %1825 }
0x144f   :  { %v1694_v5 = vpop.permute.xlu1 %1693 }
0x1450   :  { %2170 = vmatmul.msk.f32.vlgmr.msrb.gmra.mxu3 %vm312_vm1, %v1694_v5 }
0x1457   :  { %v1760_v38 = vpop.permute.xlu1 %1759 }
0x1458   :  { %2173 = vmatmul.msk.f32.vlgmr.msra.gmra.mxu2 %vm312_vm1, %v1760_v38  ;;  %2176 = vmatmul.msk.f32.vlgmr.msra.gmra.mxu3 %vm312_vm1, %v1826_v36 }
0x1461   :  { %v1652_v40 = vpop.f32.mrf.mxu2 }
0x1462   :  { %v1655_v41 = vmul.f32 0.35355338, %v1652_v40  ;;  %v2239_v40 = vld [vmem:[#allocation8 + $0x1] ss:$0 sm:$0xff] }
0x1464   :  { %v1656_v42 = vsel %vm312_vm1, %v1655_v41, -inf }
0x1465   :  { %1657 = vmax.xlane.f32.xlu0 %v1656_v42 }
0x14d3   :  { %v1718_v43 = vpop.f32.mrf.mxu3 }
0x14d4   :  { %v1721_v6 = vmul.f32 0.35355338, %v1718_v43 }
0x14d6   :  { %v1722_v44 = vsel %vm312_vm1, %v1721_v6, -inf }
0x14d7   :  { %1723 = vmax.xlane.f32.xlu1 %v1722_v44 }
0x14d8   :  { %v1658_v45 = vpop.xlane.xlu0 %1657 }
0x14d9   :  { %v1659_v47 = vsub.f32 %v1655_v41, %v1658_v45 }
0x14db   :  { %v1660_v48 = vmul.f32 1.442695, %v1659_v47  ;;  %v1784_v49 = vpop.f32.mrf.mxu2  ;;  %v1850_v52 = vpop.f32.mrf.mxu3 }
0x14dc   :  { %v1787_v50 = vmul.f32 0.35355338, %v1784_v49  ;;  %v1853_v53 = vmul.f32 0.35355338, %v1850_v52  ;;  %v1972_v52 = vld [vmem:[#allocation17 + $0x28] sm:$0xff] }
0x14dd   :  { %2312 = vpow2.f32 %v1660_v48 }
0x14de   :  { %v1788_v51 = vsel %vm312_vm1, %v1787_v50, -inf  ;;  %v1854_v56 = vsel %vm312_vm1, %v1853_v53, -inf }
0x14df   :  { %1789 = vmax.xlane.f32.xlu0 %v1788_v51  ;;  %v1973_v51 = vld [vmem:[#allocation17 + $0x30] sm:$0xff] }
0x14e3   :  { %v2313_v54 = vpop.eup %2312 }
0x14e4   :  { %v1662_v55 = vsel %vm312_vm1, %v2313_v54, 0.0 }
0x14e5   :  { %1663 = vadd.xlane.f32.xlu2 %v1662_v55  ;;  %v2187_v55 = vld [vmem:[%s3320_s21 + $0x78] sm:$0xff] }
0x14e6   :  { %2029 = vmatpush.msrb.mxu3 %v2187_v55 }
0x14e7   :  { %1855 = vmax.xlane.f32.xlu0 %v1854_v56  ;;  %v2186_v56 = vld [vmem:[%s3320_s21 + $0x70] sm:$0xff] }
0x14e8   :  { %2030 = vmatpush.msrb.mxu3 %v2186_v56 }
0x14fb   :  { %1667 = vrot.lane.b32.xlu0 %v3212_v29, %s2682_s19 }
0x14fd   :  { %1865 = vrot.lane.b32.xlu2 %v3212_v29, %s2680_s18 }
0x154a   :  { %v1724_v57 = vpop.xlane.xlu1 %1723 }
0x154b   :  { %v1725_v58 = vsub.f32 %v1721_v6, %v1724_v57 }
0x154d   :  { %v1726_v59 = vmul.f32 1.442695, %v1725_v58  ;;  %v2185_v58 = vld [vmem:[%s3320_s21 + $0x68] sm:$0xff] }
0x154e   :  { %2031 = vmatpush.msrb.mxu3 %v2185_v58 }
0x154f   :  { %2314 = vpow2.f32 %v1726_v59 }
0x1552   :  { %v1790_v60 = vpop.xlane.xlu0 %1789 }
0x1553   :  { %v1791_v61 = vsub.f32 %v1787_v50, %v1790_v60  ;;  %v1974_v50 = vld [vmem:[#allocation17 + $0x38] sm:$0xff] }
0x1554   :  { %v2184_v60 = vld [vmem:[%s3320_s21 + $0x60] sm:$0xff] }
0x1555   :  { %v2315_v62 = vpop.eup %2314  ;;  %v1792_v63 = vmul.f32 1.442695, %v1791_v61  ;;  %2032 = vmatpush.msrb.mxu3 %v2184_v60 }
0x1556   :  { %v1728_v0 = vsel %vm312_vm1, %v2315_v62, 0.0 }
0x1557   :  { %2316 = vpow2.f32 %v1792_v63  ;;  %1729 = vadd.xlane.f32.xlu0 %v1728_v0 }
0x1558   :  { %v1664_v7 = vpop.xlane.xlu2 %1663 }
0x155a   :  { %v1856_v1 = vpop.xlane.xlu0 %1855 }
0x155b   :  { %v1857_v2 = vsub.f32 %v1853_v53, %v1856_v1  ;;  %v1971_v53 = vld [vmem:[#allocation17 + $0x20] sm:$0xff] }
0x155d   :  { %v2317_v3 = vpop.eup %2316  ;;  %v1858_v37 = vmul.f32 1.442695, %v1857_v2 }
0x155e   :  { %v1794_v4 = vsel %vm312_vm1, %v2317_v3, 0.0 }
0x155f   :  { %2318 = vpow2.f32 %v1858_v37  ;;  %1795 = vadd.xlane.f32.xlu0 %v1794_v4 }
0x1560   :  { %2320 = vrcp.f32 %v1664_v7  ;;  %v1866_v21 = vpop.permute.xlu2 %1865 }
0x1565   :  { %v2319_v8 = vpop.eup %2318 }
0x1566   :  { %v1860_v46 = vsel %vm312_vm1, %v2319_v8, 0.0  ;;  %v2321_v9 = vpop.eup %2320 }
0x1567   :  { %1861 = vadd.xlane.f32.xlu1 %v1860_v46  ;;  %v1666_v10 = vmul.f32 %v2321_v9, %v2313_v54 }
0x156d   :  { %v1668_v11 = vpop.permute.xlu0 %1667 }
0x156e   :  { %1688 = vmatpush.msrb.mxu1 %v1668_v11 }
0x156f   :  { %2168 = vmatmul.msk.f32.vlgmr.msrb.gmra.mxu1 %vm312_vm1, %v1666_v10  ;;  %v2241_v10 = vld [vmem:[#allocation13 + $0x1] ss:$0 sm:$0xff] }
0x1573   :  { %1799 = vrot.lane.b32.xlu0 %v3212_v29, %s2684_s15 }
0x1580   :  { %1733 = vrot.lane.b32.xlu1 %v3212_v29, %s2685_s9  ;;  %v1626_v29 = vld [vmem:[#allocation7 + $0x38] sm:$0xff] }
0x1581   :  { %1924 = vmatpush.msrb.mxu2 %v1626_v29 }
0x1583   :  { %1925 = vmatpush.msrb.mxu2 %v1625_v30 }
0x1585   :  { %1926 = vmatpush.msrb.mxu2 %v1624_v31 }
0x1587   :  { %1927 = vmatpush.msrb.mxu2 %v1623_v32 }
0x15ca   :  { %v1730_v12 = vpop.xlane.xlu0 %1729 }
0x15d2   :  { %v1796_v13 = vpop.xlane.xlu0 %1795 }
0x15d3   :  { %2322 = vrcp.f32 %v1796_v13  ;;  %v2182_v13 = vld [vmem:[%s3320_s21 + $0x50] sm:$0xff] }
0x15d4   :  { %2324 = vrcp.f32 %v1730_v12 }
0x15d9   :  { %v2323_v14 = vpop.eup %2322 }
0x15da   :  { %v1798_v15 = vmul.f32 %v2323_v14, %v2317_v3  ;;  %v1862_v17 = vpop.xlane.xlu1 %1861  ;;  %v2325_v18 = vpop.eup %2324  ;;  %v2181_v14 = vld [vmem:[%s3320_s21 + $0x48] sm:$0xff] }
0x15db   :  { %2326 = vrcp.f32 %v1862_v17  ;;  %v1732_v19 = vmul.f32 %v2325_v18, %v2315_v62  ;;  %v2183_v62 = vld [vmem:[%s3320_s21 + $0x58] sm:$0xff] }
0x15dc   :  { %2033 = vmatpush.msrb.mxu3 %v2183_v62 }
0x15de   :  { %2034 = vmatpush.msrb.mxu3 %v2182_v13 }
0x15e0   :  { %2035 = vmatpush.msrb.mxu3 %v2181_v14 }
0x15e1   :  { %v2327_v23 = vpop.eup %2326 }
0x15e2   :  { %v1864_v24 = vmul.f32 %v2327_v23, %v2319_v8  ;;  %v2240_v8 = vld [vmem:[#allocation11 + $0x1] ss:$0 sm:$0xff] }
0x15e5   :  { %v1800_v16 = vpop.permute.xlu0 %1799 }
0x15e6   :  { %1820 = vmatpush.msra.mxu1 %v1800_v16  ;;  %v2242_v16 = vld [vmem:[#allocation19 + $0x1] ss:$0 sm:$0xff] }
0x15e7   :  { %2174 = vmatmul.msk.f32.vlgmr.msra.gmra.mxu1 %vm312_vm1, %v1798_v15  ;;  %v2180_v15 = vld [vmem:[%s3320_s21 + $0x40] sm:$0xff]  ;;  %s2694_s21 = smov [#allocation22]  }
0x15e8   :  { %1995 = vmatpush.msrb.mxu1 %v1974_v50  ;;  %2036 = vmatpush.msrb.mxu3 %v2180_v15  ;;  %s2085_s14 = sshll.u32 %s2694_s21, 4  ;;  %s2086_s14 = int_to_ptr.vmem [resolvable:$true] %s2085_s14 }
0x15ea   :  { %1996 = vmatpush.msrb.mxu1 %v1973_v51 }
0x15ec   :  { %v1690_v22 = vpop.f32.mrf.mxu1  ;;  %1997 = vmatpush.msrb.mxu1 %v1972_v52 }
0x15ee   :  { %1998 = vmatpush.msrb.mxu1 %v1971_v53 }
0x15f2   :  { %v1734_v20 = vpop.permute.xlu1 %1733 }
0x15f3   :  { %1754 = vmatpush.msra.mxu0 %v1734_v20  ;;  %v2243_v20 = vld [vmem:[#allocation20 + $0x1] ss:$0 sm:$0xff] }
0x15f4   :  { %2171 = vmatmul.msk.f32.vlgmr.msra.gmra.mxu0 %vm312_vm1, %v1732_v19 }
0x15f5   :  { %1886 = vmatpush.msrb.mxu0 %v1866_v21 }
0x15fc   :  { %2177 = vmatmul.msk.f32.vlgmr.msrb.gmra.mxu0 %vm312_vm1, %v1864_v24 }
0x1664   :  { %v1822_v27 = vpop.f32.mrf.mxu1 }
0x1671   :  { %v1756_v25 = vpop.f32.mrf.mxu0 }
0x1672   :  { %1892 = vrot.lane.b32.xlu0 %v1756_v25, %s2672_s3 }
0x1679   :  { %v1888_v28 = vpop.f32.mrf.mxu0 }
0x167a   :  { %1896 = vrot.lane.b32.xlu0 %v1822_v27, %s2665_s6  ;;  %1900 = vrot.lane.b32.xlu1 %v1888_v28, %s2692_s17 }
0x16e4   :  { %v1893_v33 = vpop.permute.xlu0 %1892 }
0x16e5   :  { %v1903_v34 = vsel %vm312_vm1, %v1690_v22, %v1893_v33 }
0x16ec   :  { %v1897_v35 = vpop.permute.xlu0 %1896  ;;  %v1901_v5 = vpop.permute.xlu1 %1900 }
0x16ed   :  { %v1904_v36 = vsel %vm590_vm3, %v1903_v34, %v1897_v35 }
0x16ee   :  { %v1905_v38 = vsel %vm592_vm4, %v1904_v36, %v1901_v5 }
0x16ef   :  { %2178 = vmatmul.msk.f32.vlgmr.msrb.gmra.mxu2 %vm280_vm0, %v1905_v38 }
0x1772   :  { %v1929_v41 = vpop.f32.mrf.mxu2 }
0x1773   :  { %v1930_v42 = vadd.f32 %v2239_v40, %v1929_v41 }
0x1775   :  { %v1936_v43 = vadd.f32 %v1930_v42, %v3208_v26 }
0x1777   :  { %v1937_v6 = vsel %vm280_vm0, %v1936_v43, 0.0 }
0x1778   :  { %1938 = vadd.xlane.f32.xlu0 %v1937_v6  ;;  %v2244_v6 = vld [vmem:[#allocation14 + $0x1] ss:$0 sm:$0xff] }
0x17eb   :  { %v1939_v44 = vpop.xlane.xlu0 %1938 }
0x17ec   :  { %v1940_v45 = vmul.f32 %v1939_v44, %v2981_v39 }
0x17ee   :  { %v1941_v47 = vsub.f32 %v1936_v43, %v1940_v45 }
0x17f0   :  { %v1942_v48 = vmul.f32 %v1941_v47, %v1941_v47 }
0x17f2   :  { %v1943_v49 = vsel %vm280_vm0, %v1942_v48, 0.0 }
0x17f3   :  { %1944 = vadd.xlane.f32.xlu1 %v1943_v49 }
0x1866   :  { %v1945_v26 = vpop.xlane.xlu1 %1944 }
0x1867   :  { %v1946_v54 = vmul.f32 0.032258064, %v1945_v26 }
0x1869   :  { %2328 = vrsqrt.f32 %v1946_v54  ;;  %vm1954_vm15 = vcmp.eq.f32.partialorder %v1946_v54, inf  ;;  %v1957_v3 = vand.u32 2147483648, %v1946_v54  ;;  %vm1956_vm1 = vcmp.eq.f32.partialorder %v1946_v54, 0.0 }
0x186f   :  { %v2329_v57 = vpop.eup %2328 }
0x1870   :  { %v1948_v59 = vmul.f32 %v2329_v57, %v1946_v54 }
0x1872   :  { %v1949_v61 = vmul.f32 %v2329_v57, %v1948_v59 }
0x1874   :  { %v1950_v63 = vmul.f32 0.5, %v1949_v61 }
0x1876   :  { %v1951_v0 = vsub.f32 1.5, %v1950_v63 }
0x1878   :  { %v1952_v1 = vmul.f32 %v2329_v57, %v1951_v0 }
0x187a   :  { %v1953_v2 = vmul.f32 %v1952_v1, %v1946_v54 }
0x187c   :  { %v1955_v37 = vsel %vm1954_vm15, %v1946_v54, %v1953_v2 }
0x187d   :  { %v1958_v4 = vsel %vm1956_vm1, %v1957_v3, %v1955_v37 }
0x187e   :  { %v1959_v7 = vadd.f32 1e-06, %v1958_v4 }
0x1880   :  { %2330 = vrcp.f32 %v1959_v7 }
0x1886   :  { %v2331_v46 = vpop.eup %2330 }
0x1887   :  { %v1961_v9 = vmul.f32 %v2331_v46, %v1941_v47  ;;  %v2245_v47 = vld [vmem:[#allocation16 + $0x1] ss:$0 sm:$0xff] }
0x1889   :  { %v1965_v11 = vmul.f32 %v2240_v8, %v1961_v9 }
0x188b   :  { %v1969_v12 = vadd.f32 %v2241_v10, %v1965_v11 }
0x188d   :  { %2179 = vmatmul.msk.f32.vlgmr.msrb.gmra.mxu1 %vm280_vm0, %v1969_v12 }
0x190a   :  { %v2000_v17 = vpop.f32.mrf.mxu1 }
0x190b   :  { %v2001_v18 = vadd.f32 %v2242_v16, %v2000_v17 }
0x190d   :  { %v2003_v19 = vmax.f32 %v2001_v18, 0.0 }
0x190f   :  { %2188 = vmatmul.msk.f32.vlgmr.msrb.gmra.mxu3 %vm1113_vm10, %v2003_v19 }
0x1992   :  { %v2038_v21 = vpop.f32.mrf.mxu3 }
0x1993   :  { %v2039_v23 = vadd.f32 %v2243_v20, %v2038_v21 }
0x1995   :  { %v2045_v24 = vadd.f32 %v2039_v23, %v1969_v12 }
0x1997   :  { %v2046_v22 = vsel %vm280_vm0, %v2045_v24, 0.0 }
0x1998   :  { %2047 = vadd.xlane.f32.xlu2 %v2046_v22 }
0x1a0b   :  { %v2048_v25 = vpop.xlane.xlu2 %2047 }
0x1a0c   :  { %v2049_v27 = vmul.f32 %v2048_v25, %v2981_v39 }
0x1a0e   :  { %v2050_v28 = vsub.f32 %v2045_v24, %v2049_v27 }
0x1a10   :  { %v2051_v29 = vmul.f32 %v2050_v28, %v2050_v28 }
0x1a12   :  { %v2052_v30 = vsel %vm280_vm0, %v2051_v29, 0.0 }
0x1a13   :  { %2053 = vadd.xlane.f32.xlu0 %v2052_v30 }
0x1a86   :  { %v2054_v31 = vpop.xlane.xlu0 %2053 }
0x1a87   :  { %v2055_v32 = vmul.f32 0.032258064, %v2054_v31 }
0x1a89   :  { %2332 = vrsqrt.f32 %v2055_v32  ;;  %vm2063_vm2 = vcmp.eq.f32.partialorder %v2055_v32, inf  ;;  %v2066_v41 = vand.u32 2147483648, %v2055_v32  ;;  %vm2065_vm3 = vcmp.eq.f32.partialorder %v2055_v32, 0.0 }
0x1a8f   :  { %v2333_v33 = vpop.eup %2332 }
0x1a90   :  { %v2057_v34 = vmul.f32 %v2333_v33, %v2055_v32 }
0x1a92   :  { %v2058_v35 = vmul.f32 %v2333_v33, %v2057_v34 }
0x1a94   :  { %v2059_v5 = vmul.f32 0.5, %v2058_v35 }
0x1a96   :  { %v2060_v36 = vsub.f32 1.5, %v2059_v5 }
0x1a98   :  { %v2061_v38 = vmul.f32 %v2333_v33, %v2060_v36 }
0x1a9a   :  { %v2062_v40 = vmul.f32 %v2061_v38, %v2055_v32 }
0x1a9c   :  { %v2064_v42 = vsel %vm2063_vm2, %v2055_v32, %v2062_v40 }
0x1a9d   :  { %v2067_v39 = vsel %vm2065_vm3, %v2066_v41, %v2064_v42 }
0x1a9e   :  { %v2068_v43 = vadd.f32 1e-06, %v2067_v39 }
0x1aa0   :  { %2334 = vrcp.f32 %v2068_v43 }
0x1aa6   :  { %v2335_v44 = vpop.eup %2334 }
0x1aa7   :  { %v2070_v45 = vmul.f32 %v2335_v44, %v2050_v28 }
0x1aa9   :  { %v2074_v48 = vmul.f32 %v2244_v6, %v2070_v45 }
0x1aab   :  { %v2078_v49 = vadd.f32 %v2245_v47, %v2074_v48 }
0x1aad   :  { %2079 = vst.msk [vmem:[#allocation22] sm:$0xff] %vm280_vm0, %v2078_v49 }
0x1aae   :  { %2090 = dma.vmem_to_hbm [thread:$0]  %s2086_s14, 128, %s2088_s27, [#allocation4]  }
0x1aaf   :  { %2662 = dma.done.wait [#allocation4], 128  }
0x1ab0   :  { %2663 = vsyncadd [#allocation4], 4294967168 }
0x1ab1   :  { %2095 = vsyncpa [#allocation3], 1 }
0x1ab2   :  { %2096 = vsyncpa [#allocation6], 1 }
0x1ab3   :  { %2097 = vsyncpa [#allocation9], 1 }
0x1ab4   :  { %2098 = vsyncpa [#allocation12], 1 }
0x1ab5   :  { %2099 = vsyncpa [#allocation15], 1 }
0x1ab6   :  { %2100 = vsyncpa [#allocation18], 1 }
0x1ab7   :  { %2101 = vsyncpa [#allocation21], 1 }
0x1ab8   :  { %2102 = vsyncpa [#allocation4], 1 }

</bundles_post_ra>
